<compile_context>
chip_gen: v7x
topology: tpu7x:2x2x1
jax: 0.10.0
libtpu: 0.0.40
codegen_flags: <defaults>
</compile_context>

<pallas_src>
import functools

import jax
import jax.numpy as jnp
from jax.experimental import pallas as pl
from jax.experimental.pallas import tpu as pltpu

SPATIAL_K = 7
PAD = SPATIAL_K // 2
_HI = jax.lax.Precision.HIGHEST


# ----------------------------------------------------------------------------
# In-kernel CBAM on a block of NB images (value-level helper).
# ----------------------------------------------------------------------------
def _cbam_block(x, w1t, w2t, t_max, t_avg):
    """x: (NB, C, HW) f32.  w1t: (C, Cr) bf16.  w2t: (Cr, C) bf16.
    t_max/t_avg: (HW, HW) bf16 Toeplitz halves of the 7x7 'same' conv."""
    nb, c, hw = x.shape

    # ---------------- channel attention (bf16 MXU matmuls) ----------------
    mx = jnp.max(x, axis=-1)                          # (NB, C) global max pool
    av = jnp.sum(x, axis=-1) * (1.0 / hw)             # (NB, C) global avg pool
    pooled = jnp.concatenate([mx, av], axis=0).astype(jnp.bfloat16)  # (2*NB, C)
    h = jnp.dot(pooled, w1t, preferred_element_type=jnp.float32)
    h = jnp.maximum(h, 0.0).astype(jnp.bfloat16)      # ReLU
    o = jnp.dot(h, w2t, preferred_element_type=jnp.float32)
    ch = jax.nn.sigmoid(o[:nb] + o[nb:])              # (NB, C)
    x = x * ch[:, :, None]                            # lane-broadcast gate

    # ---- spatial attention (7x7 conv as two bf16 MXU matmuls, no concat) ----
    mx_s = jnp.max(x, axis=1).astype(jnp.bfloat16)                # (NB, HW)
    av_s = (jnp.sum(x, axis=1) * (1.0 / c)).astype(jnp.bfloat16)  # (NB, HW)
    logits = (jnp.dot(mx_s, t_max, preferred_element_type=jnp.float32)
              + jnp.dot(av_s, t_avg, preferred_element_type=jnp.float32))
    sp = jax.nn.sigmoid(logits)                       # (NB, HW)
    return x * sp[:, None, :]                         # sublane-broadcast gate


def _qmixup_kernel(xs_ref, xu_ref,
                   w1a_ref, w2a_ref, tam_ref, taa_ref,
                   w1b_ref, w2b_ref, tbm_ref, tba_ref,
                   out_ref):
    # Stash block 1 in out_ref before computing block 2 -> halves the peak
    # live f32 footprint inside the body (matters once NB is large).
    x1 = _cbam_block(xs_ref[...].astype(jnp.float32),
                     w1a_ref[...], w2a_ref[...], tam_ref[...], taa_ref[...])
    out_ref[...] = x1.astype(out_ref.dtype)
    x2 = _cbam_block(xu_ref[...].astype(jnp.float32),
                     w1b_ref[...], w2b_ref[...], tbm_ref[...], tba_ref[...])
    out_ref[...] = (out_ref[...].astype(jnp.float32) + x2).astype(out_ref.dtype)


# ----------------------------------------------------------------------------
# Wrapper helpers (all run OUTSIDE the kernel, mostly outside the per-call jit).
# ----------------------------------------------------------------------------
def _spatial_conv_matrices(wconv, H, W):
    """Fold the (1, 2, 7, 7) 'same'-padded spatial conv weight into two dense
    matrices T_max, T_avg of shape (H*W, H*W) such that
        conv(cat([max_map, avg_map])).flatten() == max_flat @ T_max + avg_flat @ T_avg."""
    hw = H * W
    w = jnp.asarray(wconv).reshape(2, SPATIAL_K, SPATIAL_K).astype(jnp.float32)
    di = jnp.arange(H)[:, None] - jnp.arange(H)[None, :] + PAD    # (H_in, H_out)
    dj = jnp.arange(W)[:, None] - jnp.arange(W)[None, :] + PAD    # (W_in, W_out)
    vi = (di >= 0) & (di < SPATIAL_K)
    vj = (dj >= 0) & (dj < SPATIAL_K)
    di = jnp.clip(di, 0, SPATIAL_K - 1)
    dj = jnp.clip(dj, 0, SPATIAL_K - 1)
    # t[c, i_in, j_in, i_out, j_out] = w[c, i_in - i_out + PAD, j_in - j_out + PAD]
    t = w[:, di[:, None, :, None], dj[None, :, None, :]]
    t = t * (vi[:, None, :, None] & vj[None, :, None, :]).astype(jnp.float32)
    t = t.reshape(2, hw, hw)
    return t[0], t[1]


def prepare_params(params, H, W, compute_dtype=jnp.bfloat16):
    """Hoisted, run once per weight set: transpose the MLP weights, fold the
    spatial convs into Toeplitz halves, and cast everything to bf16."""
    (w1a, w2a, wca), (w1b, w2b, wcb) = params
    ta_max, ta_avg = _spatial_conv_matrices(wca, H, W)
    tb_max, tb_avg = _spatial_conv_matrices(wcb, H, W)
    cast = lambda a: jnp.asarray(a, jnp.float32).astype(compute_dtype)
    return {
        "w1a": cast(w1a.T), "w2a": cast(w2a.T),        # (C, Cr), (Cr, C)
        "ta_max": cast(ta_max), "ta_avg": cast(ta_avg),
        "w1b": cast(w1b.T), "w2b": cast(w2b.T),
        "tb_max": cast(tb_max), "tb_avg": cast(tb_avg),
    }


@functools.lru_cache(maxsize=None)
def _tpu_topology():
    """(num_tensorcores_per_chip, per-core VMEM bytes) with safe fallbacks."""
    vmem_cap = 64 << 20       # conservative: v7x per-TensorCore VMEM
    try:
        info = pltpu.get_tpu_info()
        vmem_cap = int(getattr(info, "vmem_capacity_bytes", vmem_cap))
    except Exception:
        pass
    num_tc = 1
    try:
        kind = jax.devices()[0].device_kind.lower()
        if any(t in kind for t in ("v4", "v5p", "v7")):
            num_tc = 2
    except Exception:
        pass
    return num_tc, vmem_cap


@functools.lru_cache(maxsize=None)
def _single_buffer_weights_supported():
    """Probe whether pipeline_mode=pl.Buffered(1) is honored by this JAX build."""
    try:
        def _copy(x_ref, o_ref):
            o_ref[...] = x_ref[...]
        spec = pl.BlockSpec((8, 128), lambda i: (0, 0), pipeline_mode=pl.Buffered(1))
        y = pl.pallas_call(
            _copy,
            out_shape=jax.ShapeDtypeStruct((8, 128), jnp.float32),
            grid=(1,),
            in_specs=[spec],
            out_specs=pl.BlockSpec((8, 128), lambda i: (0, 0)),
        )(jnp.zeros((8, 128), jnp.float32))
        jax.block_until_ready(y)
        return True
    except Exception:
        return False


def _weight_spec(shape, single_buffer):
    # Constant index_map: the block is fetched once; single-buffer it to save VMEM.
    if single_buffer:
        return pl.BlockSpec(shape, lambda b: (0, 0), pipeline_mode=pl.Buffered(1))
    return pl.BlockSpec(shape, lambda b: (0, 0))


def _pick_images_per_block(n, c, hw, in_isz, out_isz, weight_bytes, weight_bufs,
                           act_budget, min_steps, target_block_bytes=4 << 20):
    """Batch as many images per grid step as VMEM allows (amortizes the fixed
    Toeplitz MXU pass, pooling XLU work and ~0.35us/step overhead), while
    keeping >= min_steps grid steps so multi-TC chips retain pipeline overlap."""
    # Per-image VMEM: 2 inputs x 2 pipeline buffers + output x 2 buffers
    # + ~3 live f32 temporaries inside the body.
    per_img = c * hw * (4 * in_isz + 2 * out_isz + 3 * 4)
    budget = max(act_budget - weight_bufs * weight_bytes - (2 << 20), per_img)
    nb = int(min(n,
                 max(1, budget // per_img),
                 max(1, target_block_bytes // (c * hw * 4))))
    nb = max(nb, 1)
    while nb > 1 and (n + nb - 1) // nb < min_steps:
        nb -= 1
    while n % nb:
        nb -= 1
    return nb


def _vmem_limit(nb, c, hw, in_isz, out_isz, weight_bytes, weight_bufs, vmem_cap):
    blk = nb * c * hw
    need = (blk * (4 * in_isz + 2 * out_isz)      # double-buffered activation blocks
            + weight_bufs * weight_bytes          # weight operands
            + 8 * blk * 4                         # live f32 temporaries headroom
            + (2 << 20))                          # slack
    cap = max(int(0.9 * vmem_cap), 32 << 20)
    return int(min(max(need, 32 << 20), cap))


@functools.partial(
    jax.jit, static_argnames=("single_buffer_weights", "min_steps", "vmem_cap"))
def _qmixup_jit(x_skip, x_unet, prep, *, single_buffer_weights, min_steps, vmem_cap):
    N, C, H, W = x_skip.shape
    HW = H * W
    assert x_unet.shape == x_skip.shape
    assert prep["ta_max"].shape == (HW, HW), "prepare_params H/W mismatch"

    xs = x_skip.reshape(N, C, HW)          # free reshape (still NCHW order)
    xu = x_unet.reshape(N, C, HW)

    Cr = prep["w1a"].shape[1]
    weight_names = ("w1a", "w2a", "ta_max", "ta_avg", "w1b", "w2b", "tb_max", "tb_avg")
    weights = [prep[k] for k in weight_names]
    weight_bytes = sum(int(w.size) * jnp.dtype(w.dtype).itemsize for w in weights)
    weight_bufs = 1 if single_buffer_weights else 2

    in_isz = jnp.dtype(x_skip.dtype).itemsize
    out_isz = in_isz
    NB = _pick_images_per_block(N, C, HW, in_isz, out_isz, weight_bytes, weight_bufs,
                                int(0.9 * vmem_cap), min_steps)
    vmem_limit = _vmem_limit(NB, C, HW, in_isz, out_isz,
                             weight_bytes, weight_bufs, vmem_cap)

    img_spec = pl.BlockSpec((NB, C, HW), lambda b: (b, 0, 0))
    wspec = lambda s: _weight_spec(s, single_buffer_weights)

    out = pl.pallas_call(
        _qmixup_kernel,
        out_shape=jax.ShapeDtypeStruct((N, C, HW), x_skip.dtype),
        grid=(N // NB,),
        in_specs=[
            img_spec,                      # x_skip block
            img_spec,                      # x_unet block
            wspec((C, Cr)),                # Att1 mlp w1^T
            wspec((Cr, C)),                # Att1 mlp w2^T
            wspec((HW, HW)),               # Att1 Toeplitz (max half)
            wspec((HW, HW)),               # Att1 Toeplitz (avg half)
            wspec((C, Cr)),                # Att2 mlp w1^T
            wspec((Cr, C)),                # Att2 mlp w2^T
            wspec((HW, HW)),               # Att2 Toeplitz (max half)
            wspec((HW, HW)),               # Att2 Toeplitz (avg half)
        ],
        out_specs=pl.BlockSpec((NB, C, HW), lambda b: (b, 0, 0)),
        compiler_params=pltpu.CompilerParams(
            dimension_semantics=("parallel",),
            vmem_limit_bytes=vmem_limit),
    )(xs, xu, *weights)

    return out.reshape(N, C, H, W)


def qmixup(x_skip, x_unet, prep):
    num_tc, vmem_cap = _tpu_topology()
    return _qmixup_jit(
        x_skip, x_unet, prep,
        single_buffer_weights=_single_buffer_weights_supported(),
        # 1-TC chips (v5e/v6e): just maximize NB.  2-TC chips (v7x/v5p/v4):
        # keep >= 4 grid steps so each core still overlaps DMA with compute.
        min_steps=4 if num_tc >= 2 else 1,
        vmem_cap=int(vmem_cap))


# ----------------------------------------------------------------------------
# Deterministic parameter init (shapes follow CBAMLayer.__init__; no biases).
# ----------------------------------------------------------------------------
def init_params(key, channel):
    reduction = 1 if channel <= 16 else 16
    cr = channel // reduction
    ks = jax.random.split(key, 6)
    mk = lambda k, s: (jax.random.normal(k, s, jnp.float32) * 0.1)
    att1 = (mk(ks[0], (cr, channel)),                 # mlp conv1 weight (Cr, C)
            mk(ks[1], (channel, cr)),                 # mlp conv2 weight (C, Cr)
            mk(ks[2], (1, 2, SPATIAL_K, SPATIAL_K)))  # spatial conv weight
    att2 = (mk(ks[3], (cr, channel)),
            mk(ks[4], (channel, cr)),
            mk(ks[5], (1, 2, SPATIAL_K, SPATIAL_K)))
    return att1, att2


# ----------------------------------------------------------------------------
# Pure-JAX f32 HIGHEST reference (NCHW, mirrors the PyTorch forward exactly).
# ----------------------------------------------------------------------------
def _cbam_ref(x, w1, w2, wconv):
    mx = jnp.max(x, axis=(2, 3))
    av = jnp.mean(x, axis=(2, 3))
    mlp = lambda v: jnp.dot(jnp.maximum(jnp.dot(v, w1.T, precision=_HI), 0.0),
                            w2.T, precision=_HI)
    ch = jax.nn.sigmoid(mlp(mx) + mlp(av))[:, :, None, None]
    x = x * ch
    mx_s = jnp.max(x, axis=1, keepdims=True)
    av_s = jnp.mean(x, axis=1, keepdims=True)
    cat = jnp.concatenate([mx_s, av_s], axis=1)
    sp = jax.lax.conv_general_dilated(
        cat, wconv, window_strides=(1, 1), padding=((PAD, PAD), (PAD, PAD)),
        dimension_numbers=("NCHW", "OIHW", "NCHW"), precision=_HI)
    return x * jax.nn.sigmoid(sp)


def qmixup_ref(x_skip, x_unet, params):
    (w1a, w2a, wca), (w1b, w2b, wcb) = params
    return _cbam_ref(x_skip, w1a, w2a, wca) + _cbam_ref(x_unet, w1b, w2b, wcb)


if __name__ == "__main__":
    key = jax.random.PRNGKey(0)
    kx, ku, kp = jax.random.split(key, 3)
    N, C, H, W = 2, 4, 16, 16               # channel=4 <= 16  ->  reduction = 1
    x_skip = jax.random.normal(kx, (N, C, H, W), jnp.float32)
    x_unet = jax.random.normal(ku, (N, C, H, W), jnp.float32)
    params = init_params(kp, C)
    prep = prepare_params(params, H, W)     # Toeplitz/weight prep hoisted out of jit

    out = qmixup(x_skip, x_unet, prep)
    out = jax.block_until_ready(out)

    ref = qmixup_ref(x_skip, x_unet, params)
    assert out.shape == (N, C, H, W)
    err = float(jnp.max(jnp.abs(out.astype(jnp.float32) - ref)))
    # Kernel uses single-pass bf16 MXU matmuls; reference is f32 HIGHEST,
    # so allow a standard bf16 tolerance.
    assert jnp.allclose(out.astype(jnp.float32), ref, rtol=3e-2, atol=3e-2), err
    print("KERNEL_OK")
</pallas_src>

<mosaic_0001>
module attributes {stable_mosaic.version = 11 : i64} {
  func.func @_copy(%arg0: i32, %arg1: memref<8x128xf32, #tpu.memory_space<vmem>>, %arg2: memref<8x128xf32, #tpu.memory_space<vmem>>) attributes {dimension_semantics = [#tpu.dimension_semantics<arbitrary>], iteration_bounds = array<i64: 1>, scalar_prefetch = 0 : i64, scratch_operands = 0 : i64, tpu.core_type = #tpu.core_type<tc>, window_params = [{pipeline_mode = #tpu.pipeline_mode<synchronous>, transform_indices = @transform_0, window_bounds = array<i64: 8, 128>}, {pipeline_mode = #tpu.pipeline_mode<synchronous>, transform_indices = @transform_1, window_bounds = array<i64: 8, 128>}]} {
    %c0 = arith.constant 0 : index
    %c0_0 = arith.constant 0 : index
    %0 = vector.load %arg1[%c0, %c0_0] : memref<8x128xf32, #tpu.memory_space<vmem>>, vector<8x128xf32>
    %c0_1 = arith.constant 0 : index
    %c0_2 = arith.constant 0 : index
    %1 = vector.load %arg2[%c0_1, %c0_2] : memref<8x128xf32, #tpu.memory_space<vmem>>, vector<8x128xf32>
    tpu.vector_store %arg2[%c0_1, %c0_2], %0 {strides = array<i32>} : memref<8x128xf32, #tpu.memory_space<vmem>>, vector<8x128xf32>,
    return
  }
  func.func @transform_0(%arg0: i32) -> (i32, i32) {
    %c0_i32 = arith.constant 0 : i32
    %c0_i32_0 = arith.constant 0 : i32
    %c0_i32_1 = arith.constant 0 : i32
    return %c0_i32, %c0_i32_0 : i32, i32
  }
  func.func @transform_1(%arg0: i32) -> (i32, i32) {
    %c0_i32 = arith.constant 0 : i32
    %c0_i32_0 = arith.constant 0 : i32
    %c0_i32_1 = arith.constant 0 : i32
    return %c0_i32, %c0_i32_0 : i32, i32
  }
}

module attributes {stable_mosaic.version = 11 : i64} {
  func.func @_qmixup_kernel(%arg0: i32, %arg1: memref<2x4x256xf32, #tpu.memory_space<vmem>>, %arg2: memref<2x4x256xf32, #tpu.memory_space<vmem>>, %arg3: memref<4x4xbf16, #tpu.memory_space<vmem>>, %arg4: memref<4x4xbf16, #tpu.memory_space<vmem>>, %arg5: memref<256x256xbf16, #tpu.memory_space<vmem>>, %arg6: memref<256x256xbf16, #tpu.memory_space<vmem>>, %arg7: memref<4x4xbf16, #tpu.memory_space<vmem>>, %arg8: memref<4x4xbf16, #tpu.memory_space<vmem>>, %arg9: memref<256x256xbf16, #tpu.memory_space<vmem>>, %arg10: memref<256x256xbf16, #tpu.memory_space<vmem>>, %arg11: memref<2x4x256xf32, #tpu.memory_space<vmem>>) attributes {dimension_semantics = [#tpu.dimension_semantics<parallel>], iteration_bounds = array<i64: 1>, scalar_prefetch = 0 : i64, scratch_operands = 0 : i64, tpu.core_type = #tpu.core_type<tc>, window_params = [{transform_indices = @transform_0, window_bounds = array<i64: 2, 4, 256>}, {transform_indices = @transform_1, window_bounds = array<i64: 2, 4, 256>}, {pipeline_mode = #tpu.pipeline_mode<synchronous>, transform_indices = @transform_2, window_bounds = array<i64: 4, 4>}, {pipeline_mode = #tpu.pipeline_mode<synchronous>, transform_indices = @transform_3, window_bounds = array<i64: 4, 4>}, {pipeline_mode = #tpu.pipeline_mode<synchronous>, transform_indices = @transform_4, window_bounds = array<i64: 256, 256>}, {pipeline_mode = #tpu.pipeline_mode<synchronous>, transform_indices = @transform_5, window_bounds = array<i64: 256, 256>}, {pipeline_mode = #tpu.pipeline_mode<synchronous>, transform_indices = @transform_6, window_bounds = array<i64: 4, 4>}, {pipeline_mode = #tpu.pipeline_mode<synchronous>, transform_indices = @transform_7, window_bounds = array<i64: 4, 4>}, {pipeline_mode = #tpu.pipeline_mode<synchronous>, transform_indices = @transform_8, window_bounds = array<i64: 256, 256>}, {pipeline_mode = #tpu.pipeline_mode<synchronous>, transform_indices = @transform_9, window_bounds = array<i64: 256, 256>}, {transform_indices = @transform_10, window_bounds = array<i64: 2, 4, 256>}]} {
    %c0 = arith.constant 0 : index
    %c0_0 = arith.constant 0 : index
    %c0_1 = arith.constant 0 : index
    %0 = vector.load %arg1[%c0, %c0_0, %c0_1] : memref<2x4x256xf32, #tpu.memory_space<vmem>>, vector<2x4x256xf32>
    %c0_2 = arith.constant 0 : index
    %c0_3 = arith.constant 0 : index
    %1 = vector.load %arg3[%c0_2, %c0_3] : memref<4x4xbf16, #tpu.memory_space<vmem>>, vector<4x4xbf16>
    %c0_4 = arith.constant 0 : index
    %c0_5 = arith.constant 0 : index
    %2 = vector.load %arg4[%c0_4, %c0_5] : memref<4x4xbf16, #tpu.memory_space<vmem>>, vector<4x4xbf16>
    %c0_6 = arith.constant 0 : index
    %c0_7 = arith.constant 0 : index
    %3 = vector.load %arg5[%c0_6, %c0_7] : memref<256x256xbf16, #tpu.memory_space<vmem>>, vector<256x256xbf16>
    %c0_8 = arith.constant 0 : index
    %c0_9 = arith.constant 0 : index
    %4 = vector.load %arg6[%c0_8, %c0_9] : memref<256x256xbf16, #tpu.memory_space<vmem>>, vector<256x256xbf16>
    %cst = arith.constant dense<0xFF800000> : vector<2x4xf32>
    %5 = vector.multi_reduction <maximumf>, %0, %cst [2] : vector<2x4x256xf32> to vector<2x4xf32>
    %cst_10 = arith.constant dense<0.000000e+00> : vector<2x4xf32>
    %6 = vector.multi_reduction <add>, %0, %cst_10 [2] : vector<2x4x256xf32> to vector<2x4xf32>
    %cst_11 = arith.constant 3.906250e-03 : f32
    %7 = vector.broadcast %cst_11 : f32 to vector<2x4xf32>
    %8 = arith.mulf %6, %7 : vector<2x4xf32>
    %9 = tpu.concatenate %5, %8 in 0 : vector<2x4xf32>, vector<2x4xf32> -> vector<4x4xf32>
    %10 = arith.truncf %9 : vector<4x4xf32> to vector<4x4xbf16>
    %cst_12 = arith.constant dense<0.000000e+00> : vector<4x4xf32>
    %11 = tpu.matmul %10, %1, %cst_12 {dimension_numbers = #tpu.dot_dimension_numbers<[1], [0], [0], [1], [0, 0, 1, 1], [], []>} : vector<4x4xbf16>, vector<4x4xbf16>, vector<4x4xf32> -> vector<4x4xf32>
    %cst_13 = arith.constant 0.000000e+00 : f32
    %12 = vector.broadcast %cst_13 : f32 to vector<4x4xf32>
    %13 = arith.maximumf %11, %12 : vector<4x4xf32>
    %14 = arith.truncf %13 : vector<4x4xf32> to vector<4x4xbf16>
    %cst_14 = arith.constant dense<0.000000e+00> : vector<4x4xf32>
    %15 = tpu.matmul %14, %2, %cst_14 {dimension_numbers = #tpu.dot_dimension_numbers<[1], [0], [0], [1], [0, 0, 1, 1], [], []>} : vector<4x4xbf16>, vector<4x4xbf16>, vector<4x4xf32> -> vector<4x4xf32>
    %16 = vector.extract_strided_slice %15 {offsets = [0, 0], sizes = [2, 4], strides = [1, 1]} : vector<4x4xf32> to vector<2x4xf32>
    %17 = vector.extract_strided_slice %15 {offsets = [2, 0], sizes = [2, 4], strides = [1, 1]} : vector<4x4xf32> to vector<2x4xf32>
    %18 = arith.addf %16, %17 : vector<2x4xf32>
    %19 = arith.negf %18 : vector<2x4xf32>
    %20 = math.exp %19 : vector<2x4xf32>
    %cst_15 = arith.constant 1.000000e+00 : f32
    %21 = vector.broadcast %cst_15 : f32 to vector<2x4xf32>
    %22 = arith.addf %21, %20 : vector<2x4xf32>
    %23 = arith.divf %21, %22 : vector<2x4xf32>
    %24 = vector.shape_cast %23 : vector<2x4xf32> to vector<2x4x1xf32>
    %25 = vector.broadcast %24 : vector<2x4x1xf32> to vector<2x4x256xf32>
    %26 = arith.mulf %0, %25 : vector<2x4x256xf32>
    %cst_16 = arith.constant dense<0xFF800000> : vector<2x256xf32>
    %27 = vector.multi_reduction <maximumf>, %26, %cst_16 [1] : vector<2x4x256xf32> to vector<2x256xf32>
    %28 = arith.truncf %27 : vector<2x256xf32> to vector<2x256xbf16>
    %cst_17 = arith.constant dense<0.000000e+00> : vector<2x256xf32>
    %29 = vector.multi_reduction <add>, %26, %cst_17 [1] : vector<2x4x256xf32> to vector<2x256xf32>
    %cst_18 = arith.constant 2.500000e-01 : f32
    %30 = vector.broadcast %cst_18 : f32 to vector<2x256xf32>
    %31 = arith.mulf %29, %30 : vector<2x256xf32>
    %32 = arith.truncf %31 : vector<2x256xf32> to vector<2x256xbf16>
    %cst_19 = arith.constant dense<0.000000e+00> : vector<2x256xf32>
    %33 = tpu.matmul %28, %3, %cst_19 {dimension_numbers = #tpu.dot_dimension_numbers<[1], [0], [0], [1], [0, 0, 1, 1], [], []>} : vector<2x256xbf16>, vector<256x256xbf16>, vector<2x256xf32> -> vector<2x256xf32>
    %cst_20 = arith.constant dense<0.000000e+00> : vector<2x256xf32>
    %34 = tpu.matmul %32, %4, %cst_20 {dimension_numbers = #tpu.dot_dimension_numbers<[1], [0], [0], [1], [0, 0, 1, 1], [], []>} : vector<2x256xbf16>, vector<256x256xbf16>, vector<2x256xf32> -> vector<2x256xf32>
    %35 = arith.addf %33, %34 : vector<2x256xf32>
    %36 = arith.negf %35 : vector<2x256xf32>
    %37 = math.exp %36 : vector<2x256xf32>
    %cst_21 = arith.constant 1.000000e+00 : f32
    %38 = vector.broadcast %cst_21 : f32 to vector<2x256xf32>
    %39 = arith.addf %38, %37 : vector<2x256xf32>
    %40 = arith.divf %38, %39 : vector<2x256xf32>
    %41 = vector.shape_cast %40 : vector<2x256xf32> to vector<2x1x256xf32>
    %42 = vector.broadcast %41 : vector<2x1x256xf32> to vector<2x4x256xf32>
    %43 = arith.mulf %26, %42 : vector<2x4x256xf32>
    %c0_22 = arith.constant 0 : index
    %c0_23 = arith.constant 0 : index
    %c0_24 = arith.constant 0 : index
    %44 = vector.load %arg11[%c0_22, %c0_23, %c0_24] : memref<2x4x256xf32, #tpu.memory_space<vmem>>, vector<2x4x256xf32>
    tpu.vector_store %arg11[%c0_22, %c0_23, %c0_24], %43 {strides = array<i32>} : memref<2x4x256xf32, #tpu.memory_space<vmem>>, vector<2x4x256xf32>,
    %c0_25 = arith.constant 0 : index
    %c0_26 = arith.constant 0 : index
    %c0_27 = arith.constant 0 : index
    %45 = vector.load %arg2[%c0_25, %c0_26, %c0_27] : memref<2x4x256xf32, #tpu.memory_space<vmem>>, vector<2x4x256xf32>
    %c0_28 = arith.constant 0 : index
    %c0_29 = arith.constant 0 : index
    %46 = vector.load %arg7[%c0_28, %c0_29] : memref<4x4xbf16, #tpu.memory_space<vmem>>, vector<4x4xbf16>
    %c0_30 = arith.constant 0 : index
    %c0_31 = arith.constant 0 : index
    %47 = vector.load %arg8[%c0_30, %c0_31] : memref<4x4xbf16, #tpu.memory_space<vmem>>, vector<4x4xbf16>
    %c0_32 = arith.constant 0 : index
    %c0_33 = arith.constant 0 : index
    %48 = vector.load %arg9[%c0_32, %c0_33] : memref<256x256xbf16, #tpu.memory_space<vmem>>, vector<256x256xbf16>
    %c0_34 = arith.constant 0 : index
    %c0_35 = arith.constant 0 : index
    %49 = vector.load %arg10[%c0_34, %c0_35] : memref<256x256xbf16, #tpu.memory_space<vmem>>, vector<256x256xbf16>
    %cst_36 = arith.constant dense<0xFF800000> : vector<2x4xf32>
    %50 = vector.multi_reduction <maximumf>, %45, %cst_36 [2] : vector<2x4x256xf32> to vector<2x4xf32>
    %cst_37 = arith.constant dense<0.000000e+00> : vector<2x4xf32>
    %51 = vector.multi_reduction <add>, %45, %cst_37 [2] : vector<2x4x256xf32> to vector<2x4xf32>
    %cst_38 = arith.constant 3.906250e-03 : f32
    %52 = vector.broadcast %cst_38 : f32 to vector<2x4xf32>
    %53 = arith.mulf %51, %52 : vector<2x4xf32>
    %54 = tpu.concatenate %50, %53 in 0 : vector<2x4xf32>, vector<2x4xf32> -> vector<4x4xf32>
    %55 = arith.truncf %54 : vector<4x4xf32> to vector<4x4xbf16>
    %cst_39 = arith.constant dense<0.000000e+00> : vector<4x4xf32>
    %56 = tpu.matmul %55, %46, %cst_39 {dimension_numbers = #tpu.dot_dimension_numbers<[1], [0], [0], [1], [0, 0, 1, 1], [], []>} : vector<4x4xbf16>, vector<4x4xbf16>, vector<4x4xf32> -> vector<4x4xf32>
    %cst_40 = arith.constant 0.000000e+00 : f32
    %57 = vector.broadcast %cst_40 : f32 to vector<4x4xf32>
    %58 = arith.maximumf %56, %57 : vector<4x4xf32>
    %59 = arith.truncf %58 : vector<4x4xf32> to vector<4x4xbf16>
    %cst_41 = arith.constant dense<0.000000e+00> : vector<4x4xf32>
    %60 = tpu.matmul %59, %47, %cst_41 {dimension_numbers = #tpu.dot_dimension_numbers<[1], [0], [0], [1], [0, 0, 1, 1], [], []>} : vector<4x4xbf16>, vector<4x4xbf16>, vector<4x4xf32> -> vector<4x4xf32>
    %61 = vector.extract_strided_slice %60 {offsets = [0, 0], sizes = [2, 4], strides = [1, 1]} : vector<4x4xf32> to vector<2x4xf32>
    %62 = vector.extract_strided_slice %60 {offsets = [2, 0], sizes = [2, 4], strides = [1, 1]} : vector<4x4xf32> to vector<2x4xf32>
    %63 = arith.addf %61, %62 : vector<2x4xf32>
    %64 = arith.negf %63 : vector<2x4xf32>
    %65 = math.exp %64 : vector<2x4xf32>
    %cst_42 = arith.constant 1.000000e+00 : f32
    %66 = vector.broadcast %cst_42 : f32 to vector<2x4xf32>
    %67 = arith.addf %66, %65 : vector<2x4xf32>
    %68 = arith.divf %66, %67 : vector<2x4xf32>
    %69 = vector.shape_cast %68 : vector<2x4xf32> to vector<2x4x1xf32>
    %70 = vector.broadcast %69 : vector<2x4x1xf32> to vector<2x4x256xf32>
    %71 = arith.mulf %45, %70 : vector<2x4x256xf32>
    %cst_43 = arith.constant dense<0xFF800000> : vector<2x256xf32>
    %72 = vector.multi_reduction <maximumf>, %71, %cst_43 [1] : vector<2x4x256xf32> to vector<2x256xf32>
    %73 = arith.truncf %72 : vector<2x256xf32> to vector<2x256xbf16>
    %cst_44 = arith.constant dense<0.000000e+00> : vector<2x256xf32>
    %74 = vector.multi_reduction <add>, %71, %cst_44 [1] : vector<2x4x256xf32> to vector<2x256xf32>
    %cst_45 = arith.constant 2.500000e-01 : f32
    %75 = vector.broadcast %cst_45 : f32 to vector<2x256xf32>
    %76 = arith.mulf %74, %75 : vector<2x256xf32>
    %77 = arith.truncf %76 : vector<2x256xf32> to vector<2x256xbf16>
    %cst_46 = arith.constant dense<0.000000e+00> : vector<2x256xf32>
    %78 = tpu.matmul %73, %48, %cst_46 {dimension_numbers = #tpu.dot_dimension_numbers<[1], [0], [0], [1], [0, 0, 1, 1], [], []>} : vector<2x256xbf16>, vector<256x256xbf16>, vector<2x256xf32> -> vector<2x256xf32>
    %cst_47 = arith.constant dense<0.000000e+00> : vector<2x256xf32>
    %79 = tpu.matmul %77, %49, %cst_47 {dimension_numbers = #tpu.dot_dimension_numbers<[1], [0], [0], [1], [0, 0, 1, 1], [], []>} : vector<2x256xbf16>, vector<256x256xbf16>, vector<2x256xf32> -> vector<2x256xf32>
    %80 = arith.addf %78, %79 : vector<2x256xf32>
    %81 = arith.negf %80 : vector<2x256xf32>
    %82 = math.exp %81 : vector<2x256xf32>
    %cst_48 = arith.constant 1.000000e+00 : f32
    %83 = vector.broadcast %cst_48 : f32 to vector<2x256xf32>
    %84 = arith.addf %83, %82 : vector<2x256xf32>
    %85 = arith.divf %83, %84 : vector<2x256xf32>
    %86 = vector.shape_cast %85 : vector<2x256xf32> to vector<2x1x256xf32>
    %87 = vector.broadcast %86 : vector<2x1x256xf32> to vector<2x4x256xf32>
    %88 = arith.mulf %71, %87 : vector<2x4x256xf32>
    %c0_49 = arith.constant 0 : index
    %c0_50 = arith.constant 0 : index
    %c0_51 = arith.constant 0 : index
    %89 = vector.load %arg11[%c0_49, %c0_50, %c0_51] : memref<2x4x256xf32, #tpu.memory_space<vmem>>, vector<2x4x256xf32>
    %90 = arith.addf %89, %88 : vector<2x4x256xf32>
    %c0_52 = arith.constant 0 : index
    %c0_53 = arith.constant 0 : index
    %c0_54 = arith.constant 0 : index
    %91 = vector.load %arg11[%c0_52, %c0_53, %c0_54] : memref<2x4x256xf32, #tpu.memory_space<vmem>>, vector<2x4x256xf32>
    tpu.vector_store %arg11[%c0_52, %c0_53, %c0_54], %90 {strides = array<i32>} : memref<2x4x256xf32, #tpu.memory_space<vmem>>, vector<2x4x256xf32>,
    return
  }
  func.func @transform_0(%arg0: i32) -> (i32, i32, i32) {
    %c0_i32 = arith.constant 0 : i32
    %c0_i32_0 = arith.constant 0 : i32
    %c0_i32_1 = arith.constant 0 : i32
    return %arg0, %c0_i32, %c0_i32_0 : i32, i32, i32
  }
  func.func @transform_1(%arg0: i32) -> (i32, i32, i32) {
    %c0_i32 = arith.constant 0 : i32
    %c0_i32_0 = arith.constant 0 : i32
    %c0_i32_1 = arith.constant 0 : i32
    return %arg0, %c0_i32, %c0_i32_0 : i32, i32, i32
  }
  func.func @transform_2(%arg0: i32) -> (i32, i32) {
    %c0_i32 = arith.constant 0 : i32
    %c0_i32_0 = arith.constant 0 : i32
    %c0_i32_1 = arith.constant 0 : i32
    return %c0_i32, %c0_i32_0 : i32, i32
  }
  func.func @transform_3(%arg0: i32) -> (i32, i32) {
    %c0_i32 = arith.constant 0 : i32
    %c0_i32_0 = arith.constant 0 : i32
    %c0_i32_1 = arith.constant 0 : i32
    return %c0_i32, %c0_i32_0 : i32, i32
  }
  func.func @transform_4(%arg0: i32) -> (i32, i32) {
    %c0_i32 = arith.constant 0 : i32
    %c0_i32_0 = arith.constant 0 : i32
    %c0_i32_1 = arith.constant 0 : i32
    return %c0_i32, %c0_i32_0 : i32, i32
  }
  func.func @transform_5(%arg0: i32) -> (i32, i32) {
    %c0_i32 = arith.constant 0 : i32
    %c0_i32_0 = arith.constant 0 : i32
    %c0_i32_1 = arith.constant 0 : i32
    return %c0_i32, %c0_i32_0 : i32, i32
  }
  func.func @transform_6(%arg0: i32) -> (i32, i32) {
    %c0_i32 = arith.constant 0 : i32
    %c0_i32_0 = arith.constant 0 : i32
    %c0_i32_1 = arith.constant 0 : i32
    return %c0_i32, %c0_i32_0 : i32, i32
  }
  func.func @transform_7(%arg0: i32) -> (i32, i32) {
    %c0_i32 = arith.constant 0 : i32
    %c0_i32_0 = arith.constant 0 : i32
    %c0_i32_1 = arith.constant 0 : i32
    return %c0_i32, %c0_i32_0 : i32, i32
  }
  func.func @transform_8(%arg0: i32) -> (i32, i32) {
    %c0_i32 = arith.constant 0 : i32
    %c0_i32_0 = arith.constant 0 : i32
    %c0_i32_1 = arith.constant 0 : i32
    return %c0_i32, %c0_i32_0 : i32, i32
  }
  func.func @transform_9(%arg0: i32) -> (i32, i32) {
    %c0_i32 = arith.constant 0 : i32
    %c0_i32_0 = arith.constant 0 : i32
    %c0_i32_1 = arith.constant 0 : i32
    return %c0_i32, %c0_i32_0 : i32, i32
  }
  func.func @transform_10(%arg0: i32) -> (i32, i32, i32) {
    %c0_i32 = arith.constant 0 : i32
    %c0_i32_0 = arith.constant 0 : i32
    %c0_i32_1 = arith.constant 0 : i32
    return %arg0, %c0_i32, %c0_i32_0 : i32, i32, i32
  }
}

</mosaic_0001>

<bundles_post_ra>
// kernel: tpu_custom_call.1
= control target key start
LH: loop header
LB: loop body
LE: loop exit
PB: predicated region body
PF: predicated region fallthrough
CT: control target
= control target key end

     0   :  { %6 = vsyncpa [#allocation3], 0  ;;  %s124_s0 = inlined_call_operand.hbm [shape: f32[8,128], index: 0, kind: input, shape index: {}]   ;;  %s125_s1 = inlined_call_operand.hbm [shape: f32[8,128], index: 1, kind: output, shape index: {}]  }
   0x1   :  { %7 = vsyncpa [#allocation4], 0  ;;  %s88_s6 = smov [#allocation2]   ;;  %s40_s10 = scalar_lea.hbm %s124_s0, 128 }
   0x2   :  { %s14_s7 = sshll.u32 %s88_s6, 4  ;;  %p41_p0 = scmp.ne.s32.totalorder %s124_s0, %s40_s10  ;;  %s15_s7 = int_to_ptr.vmem [resolvable:$true] %s14_s7 }
   0x3   :  { %p44_p1 = scmp.lt.u32.totalorder %s40_s10, %s124_s0 }
   0x5   :  { %p46_p2 = pnand %p44_p1, %p41_p0 }
   0x7   :  { %49 = shalt.err (!%p46_p2)
}
   0x8   :  { %s50_s15 = scalar_lea.vmem %s15_s7, 128  ;;  %p55_p4 = scmp.lt.s32.totalorder %s15_s7, %s15_s7 }
   0x9   :  { %p51_p3 = scmp.ne.s32.totalorder %s15_s7, %s50_s15  ;;  %p56_p5 = scmp.lt.s32.totalorder %s50_s15, %s50_s15 }
   0xb   :  { %p57_p6 = por %p56_p5, %p55_p4 }
   0xd   :  { %p58_p7 = pnand %p57_p6, %p51_p3 }
   0xf   :  { %61 = shalt.err (!%p58_p7)
}
  0x10   :  { %17 = dma.hbm_to_vmem [thread:$0]  %s124_s0, 128, %s15_s7, [#allocation3]  }
  0x11   :  { %84 = dma.done.wait [#allocation3], 128  }
  0x12   :  { %85 = vsyncadd [#allocation3], 4294967168  ;;  %s89_s18 = smov [#allocation5]   ;;  %v21_v0 = vld [vmem:[#allocation2] sm:$0xff] }
  0x13   :  { %s29_s19 = sshll.u32 %s89_s18, 4  ;;  %22 = vst [vmem:[#allocation5] sm:$0xff] %v21_v0  ;;  %s30_s19 = int_to_ptr.vmem [resolvable:$true] %s29_s19 }
  0x14   :  { %s62_s20 = scalar_lea.vmem %s30_s19, 128  ;;  %p67_p9 = scmp.lt.s32.totalorder %s30_s19, %s30_s19 }
  0x15   :  { %p63_p8 = scmp.ne.s32.totalorder %s30_s19, %s62_s20  ;;  %p68_p10 = scmp.lt.s32.totalorder %s62_s20, %s62_s20 }
  0x17   :  { %p69_p11 = por %p68_p10, %p67_p9 }
  0x19   :  { %p70_p12 = pnand %p69_p11, %p63_p8 }
  0x1b   :  { %73 = shalt.err (!%p70_p12)
}
  0x1c   :  { %s74_s23 = scalar_lea.hbm %s125_s1, 128 }
  0x1d   :  { %p75_p13 = scmp.ne.s32.totalorder %s125_s1, %s74_s23  ;;  %p78_p0 = scmp.lt.u32.totalorder %s74_s23, %s125_s1 }
  0x1f   :  { %p80_p1 = pnand %p78_p0, %p75_p13 }
  0x21   :  { %83 = shalt.err (!%p80_p1)
}
  0x22   :  { %32 = dma.vmem_to_hbm [thread:$0]  %s30_s19, 128, %s125_s1, [#allocation4]  }
  0x23   :  { %86 = dma.done.wait [#allocation4], 128  }
  0x24   :  { %87 = vsyncadd [#allocation4], 4294967168 }
  0x25   :  { %36 = vsyncpa [#allocation3], 1 }
  0x26   :  { %37 = vsyncpa [#allocation4], 1 }

// kernel: _qmixup_jit.1
= control target key start
LH: loop header
LB: loop body
LE: loop exit
PB: predicated region body
PF: predicated region fallthrough
CT: control target
= control target key end

     0   :  { %15 = vsyncpa [#allocation3], 0  ;;  %s2600_s0 = inlined_call_operand.vmem [shape: f32[2,4,256], index: 0, kind: input, shape index: {}]   ;;  %s2601_s1 = inlined_call_operand.vmem [shape: f32[2,4,256], index: 1, kind: input, shape index: {}]   ;;  %s2602_s2 = inlined_call_operand.vmem [shape: bf16[4,4], index: 2, kind: input, shape index: {}]   ;;  %s2603_s3 = inlined_call_operand.vmem [shape: bf16[4,4], index: 3, kind: input, shape index: {}]   ;;  %s2604_s4 = inlined_call_operand.vmem [shape: bf16[256,256], index: 4, kind: input, shape index: {}]   ;;  %s2605_s5 = inlined_call_operand.hbm [shape: bf16[256,256], index: 5, kind: input, shape index: {}]   ;;  %s2606_s6 = inlined_call_operand.vmem [shape: bf16[4,4], index: 6, kind: input, shape index: {}]   ;;  %s2607_s7 = inlined_call_operand.vmem [shape: bf16[4,4], index: 7, kind: input, shape index: {}]   ;;  %s2608_s8 = inlined_call_operand.hbm [shape: bf16[256,256], index: 8, kind: input, shape index: {}]   ;;  %s2609_s9 = inlined_call_operand.hbm [shape: bf16[256,256], index: 9, kind: input, shape index: {}]   ;;  %s2610_s10 = inlined_call_operand.vmem [shape: f32[2,4,256], index: 10, kind: output, shape index: {}]  }
   0x1   :  { %16 = vsyncpa [#allocation5], 0  ;;  %s2221_s13 = smov [#allocation4]   ;;  %s2222_s15 = smov [#allocation2]  }
   0x2   :  { %s48_s14 = sshll.u32 %s2221_s13, 4  ;;  %s32_s16 = sshll.u32 %s2222_s15, 4  ;;  %s49_s14 = int_to_ptr.vmem [resolvable:$true] %s48_s14  ;;  %s2285_s16 = int_to_ptr.vmem [resolvable:$true] %s32_s16 }
   0x3   :  { %s2151_s19 = scalar_lea.hbm %s2608_s8, 4096 }
   0x4   :  { %p2152_p0 = scmp.ne.s32.totalorder %s2608_s8, %s2151_s19  ;;  %p2155_p1 = scmp.lt.u32.totalorder %s2151_s19, %s2608_s8 }
   0x6   :  { %p2157_p2 = pnand %p2155_p1, %p2152_p0 }
   0x8   :  { %2160 = shalt.err (!%p2157_p2)
}
   0x9   :  { %s2161_s24 = scalar_lea.vmem %s49_s14, 4096  ;;  %p2166_p4 = scmp.lt.s32.totalorder %s49_s14, %s49_s14 }
   0xa   :  { %p2162_p3 = scmp.ne.s32.totalorder %s49_s14, %s2161_s24  ;;  %p2167_p5 = scmp.lt.s32.totalorder %s2161_s24, %s2161_s24 }
   0xc   :  { %p2168_p6 = por %p2167_p5, %p2166_p4 }
   0xe   :  { %p2169_p7 = pnand %p2168_p6, %p2162_p3 }
  0x10   :  { %2172 = shalt.err (!%p2169_p7)
}
  0x11   :  { %s2223_s25 = smov 128   ;;  %s2224_s26 = smov 8  }
  0x12   :  { %54 = dma.hbm_to_vmem [thread:$0]  %s2608_s8, 4096, %s49_s14, [#allocation5], %s2223_s25, %s2223_s25, %s2224_s26  }
  0x13   :  { %s2173_s11 = scalar_lea.hbm %s2605_s5, 4096 }
  0x14   :  { %p2174_p8 = scmp.ne.s32.totalorder %s2605_s5, %s2173_s11  ;;  %p2177_p9 = scmp.lt.u32.totalorder %s2173_s11, %s2605_s5 }
  0x16   :  { %p2179_p10 = pnand %p2177_p9, %p2174_p8 }
  0x18   :  { %2182 = shalt.err (!%p2179_p10)
}
  0x19   :  { %s2183_s18 = scalar_lea.vmem %s2285_s16, 4096  ;;  %p2188_p12 = scmp.lt.s32.totalorder %s2285_s16, %s2285_s16 }
  0x1a   :  { %p2184_p11 = scmp.ne.s32.totalorder %s2285_s16, %s2183_s18  ;;  %p2189_p13 = scmp.lt.s32.totalorder %s2183_s18, %s2183_s18 }
  0x1c   :  { %p2190_p0 = por %p2189_p13, %p2188_p12 }
  0x1e   :  { %p2191_p1 = pnand %p2190_p0, %p2184_p11 }
  0x20   :  { %2194 = shalt.err (!%p2191_p1)
}
  0x21   :  { %38 = dma.hbm_to_vmem [thread:$0]  %s2605_s5, 4096, %s2285_s16, [#allocation3], %s2223_s25, %s2223_s25, %s2224_s26  }
  0x22   :  { %s2225_s19 = smov [#allocation6]   ;;  %s2195_s23 = scalar_lea.hbm %s2609_s9, 4096 }
  0x23   :  { %s60_s20 = sshll.u32 %s2225_s19, 4  ;;  %p2196_p2 = scmp.ne.s32.totalorder %s2609_s9, %s2195_s23  ;;  %s61_s20 = int_to_ptr.vmem [resolvable:$true] %s60_s20 }
  0x24   :  { %p2199_p3 = scmp.lt.u32.totalorder %s2195_s23, %s2609_s9 }
  0x26   :  { %p2201_p4 = pnand %p2199_p3, %p2196_p2 }
  0x28   :  { %2204 = shalt.err (!%p2201_p4)
}
  0x29   :  { %s2205_s30 = scalar_lea.vmem %s61_s20, 4096  ;;  %p2210_p6 = scmp.lt.s32.totalorder %s61_s20, %s61_s20 }
  0x2a   :  { %p2206_p5 = scmp.ne.s32.totalorder %s61_s20, %s2205_s30  ;;  %p2211_p7 = scmp.lt.s32.totalorder %s2205_s30, %s2205_s30 }
  0x2c   :  { %p2212_p8 = por %p2211_p7, %p2210_p6 }
  0x2e   :  { %p2213_p9 = pnand %p2212_p8, %p2206_p5 }
  0x30   :  { %2216 = shalt.err (!%p2213_p9)
}
  0x31   :  { %66 = dma.hbm_to_vmem [thread:$0]  %s2609_s9, 4096, %s61_s20, [#allocation5], %s2223_s25, %s2223_s25, %s2224_s26  }
  0x32   :  { %2217 = dma.done.wait [#allocation3], 4096  }
  0x33   :  { %2218 = vsyncadd [#allocation3], 4294963200 }
  0x34   :  { %2219 = dma.done.wait [#allocation5], 8192  }
  0x35   :  { %2220 = vsyncadd [#allocation5], 4294959104  ;;  %vm151_vm0 = vcmask 1043456   ;;  %v2340_v0 = vld [vmem:[%s2600_s0] sm:$0xff]  ;;  %v2345_v1 = vld [vmem:[%s2600_s0 + $0x8] sm:$0xff]  ;;  %vm202_vm1 = vcmask 1041408   ;;  %v176_v37 = vlaneseq }
  0x36   :  { %v2350_v2 = vld [vmem:[%s2601_s1] sm:$0xff]  ;;  %v147_v3 = vcombine.high %v2340_v0, %v2340_v0  ;;  %v162_v4 = vsel %vm151_vm0, %v2340_v0, 0.0  ;;  %v152_v5 = vsel %vm151_vm0, %v2340_v0, -inf  ;;  %v148_v6 = vcombine.high %v2345_v1, %v2345_v1  ;;  %v2363_v7 = vld [vmem:[%s2601_s1 + $0x8] sm:$0xff] }
  0x37   :  { %v167_v8 = vsel %vm151_vm0, %v2345_v1, 0.0  ;;  %v157_v9 = vsel %vm151_vm0, %v2345_v1, -inf  ;;  %v979_v10 = vcombine.high %v2350_v2, %v2350_v2  ;;  %v980_v17 = vcombine.high %v2363_v7, %v2363_v7  ;;  %v79_v32 = vld [vmem:[%s2602_s2] sm:$0x3] }
  0x38   :  { %v163_v11 = vsel %vm151_vm0, %v147_v3, 0.0  ;;  %v153_v12 = vsel %vm151_vm0, %v147_v3, -inf  ;;  %v168_v13 = vsel %vm151_vm0, %v148_v6, 0.0  ;;  %v158_v14 = vsel %vm151_vm0, %v148_v6, -inf  ;;  %v911_v35 = vld [vmem:[%s2606_s6] sm:$0x3] }
  0x39   :  { %v164_v15 = vadd.f32 %v163_v11, %v162_v4  ;;  %v154_v16 = vmax.f32 %v152_v5, %v153_v12  ;;  %v169_v18 = vadd.f32 %v168_v13, %v167_v8  ;;  %v159_v19 = vmax.f32 %v157_v9, %v158_v14  ;;  %v80_v53 = vld [vmem:[%s2603_s3] sm:$0x3] }
  0x3a   :  { %v993_v20 = vsel %vm151_vm0, %v2350_v2, 0.0  ;;  %v994_v21 = vsel %vm151_vm0, %v979_v10, 0.0  ;;  %v998_v22 = vsel %vm151_vm0, %v2363_v7, 0.0  ;;  %v999_v23 = vsel %vm151_vm0, %v980_v17, 0.0  ;;  %v912_v11 = vld [vmem:[%s2607_s7] sm:$0x3] }
  0x3b   :  { %165 = vadd.xlane.f32.xlu0 %v164_v15  ;;  %155 = vmax.xlane.f32.xlu1 %v154_v16  ;;  %v995_v24 = vadd.f32 %v994_v21, %v993_v20  ;;  %v1000_v25 = vadd.f32 %v999_v23, %v998_v22  ;;  %v983_v26 = vsel %vm151_vm0, %v2350_v2, -inf  ;;  %v984_v27 = vsel %vm151_vm0, %v979_v10, -inf }
  0x3c   :  { %v988_v28 = vsel %vm151_vm0, %v2363_v7, -inf  ;;  %v989_v29 = vsel %vm151_vm0, %v980_v17, -inf  ;;  %v985_v30 = vmax.f32 %v983_v26, %v984_v27  ;;  %v2226_v33 = vmov 0.0   ;;  %v1937_v26 = vld [vmem:[#allocation2 + $0x4] ss:$8 sps:$4 sm:$0xff]  }
  0x3d   :  { %v990_v31 = vmax.f32 %v988_v28, %v989_v29  ;;  %1890 = vmatprep.subr.bf16.mxu0 %v2226_v33  ;;  %v210_v34 = vsel %vm202_vm1, %v79_v32, 0  ;;  %1902 = vmatprep.subr.bf16.mxu1 %v2226_v33  ;;  %vm2227_vm2 = vmmov 0   ;;  %v1035_v36 = vsel %vm202_vm1, %v911_v35, 0  ;;  %v1940_v27 = vld [vmem:[#allocation2 + $0x14] ss:$8 sps:$4 sm:$0xff]  }
  0x3e   :  { %1891 = vmatpush3.bf16.msra.mxu0 %v210_v34  ;;  %1892 = vmatprep.mubr.msk.bf16.mxu0 %vm2227_vm2, %v2226_v33  ;;  %v177_v38 = vand.u32 127, %v176_v37  ;;  %v2399_v39 = vshrl.u32 %v176_v37, 7  ;;  %vm199_vm3 = vcmask 1043459   ;;  %vm186_vm4 = vcmask 1041409   ;;  %v1944_v28 = vld [vmem:[#allocation6] ss:$8 sps:$4 sm:$0xff]  }
  0x3f   :  { %170 = vadd.xlane.f32.xlu0 %v169_v18  ;;  %160 = vmax.xlane.f32.xlu1 %v159_v19  ;;  %vm205_vm5 = vcmask 31744   ;;  %v258_v62 = vsel %vm202_vm1, %v80_v53, 0  ;;  %v1083_v12 = vsel %vm202_vm1, %v912_v11, 0  ;;  %v1946_v29 = vld [vmem:[#allocation6 + $0x4] ss:$8 sps:$4 sm:$0xff]  }
  0x40   :  { %1896 = vmatprep.subr.bf16.mxu0 %v2226_v33  ;;  %1904 = vmatprep.mubr.msk.bf16.mxu1 %vm2227_vm2, %v2226_v33  ;;  %v180_v42 = vsub.s32 %v177_v38, %v2399_v39  ;;  %v1943_v32 = vld [vmem:[#allocation2 + $0x24] ss:$8 sps:$4 sm:$0xff]   ;;  %v1941_v35 = vld [vmem:[#allocation2 + $0x20] ss:$8 sps:$4 sm:$0xff]   ;;  %v1964_v38 = vld [vmem:[#allocation6 + $0x34] ss:$8 sps:$4 sm:$0xff]  }
  0x41   :  { %1903 = vmatpush3.bf16.msra.mxu1 %v1035_v36  ;;  %v1958_v34 = vld [vmem:[#allocation6 + $0x24] ss:$8 sps:$4 sm:$0xff]   ;;  %v1949_v36 = vld [vmem:[#allocation2 + $0x34] ss:$8 sps:$4 sm:$0xff]   ;;  %v1956_v37 = vld [vmem:[#allocation6 + $0x20] ss:$8 sps:$4 sm:$0xff]  }
  0x42   :  { %1908 = vmatprep.subr.bf16.mxu1 %v2226_v33  ;;  %v1973_v53 = vld [vmem:[#allocation2 + $0x74] ss:$8 sps:$4 sm:$0xff]  }
  0x43   :  { %996 = vadd.xlane.f32.xlu0 %v995_v24  ;;  %1001 = vadd.xlane.f32.xlu1 %v1000_v25  ;;  %v1935_v25 = vld [vmem:[#allocation2] ss:$8 sps:$4 sm:$0xff]  }
  0x47   :  { %986 = vmax.xlane.f32.xlu0 %v985_v30  ;;  %991 = vmax.xlane.f32.xlu1 %v990_v31  ;;  %v1938_v30 = vld [vmem:[#allocation2 + $0x10] ss:$8 sps:$4 sm:$0xff]   ;;  %v1952_v31 = vld [vmem:[#allocation6 + $0x14] ss:$8 sps:$4 sm:$0xff]  }
  0xc8   :  { %v166_v40 = vpop.xlane.xlu0 %165  ;;  %v156_v41 = vpop.xlane.xlu1 %155 }
  0xc9   :  { %v172_v43 = vmul.f32 0.00390625, %v166_v40  ;;  %v181_v49 = vrot.slane %v156_v41, %v180_v42  ;;  %v1947_v40 = vld [vmem:[#allocation2 + $0x30] ss:$8 sps:$4 sm:$0xff]   ;;  %v1955_v41 = vld [vmem:[#allocation2 + $0x44] ss:$8 sps:$4 sm:$0xff]  }
  0xcb   :  { %v194_v48 = vrot.slane %v172_v43, %v180_v42  ;;  %v1970_v43 = vld [vmem:[#allocation6 + $0x44] ss:$8 sps:$4 sm:$0xff]  }
  0xcc   :  { %v171_v44 = vpop.xlane.xlu0 %170  ;;  %v161_v45 = vpop.xlane.xlu1 %160 }
  0xcd   :  { %v173_v46 = vmul.f32 0.00390625, %v171_v44  ;;  %v185_v47 = vrot.slane %v161_v45, %v180_v42  ;;  %v1953_v44 = vld [vmem:[#allocation2 + $0x40] ss:$8 sps:$4 sm:$0xff]   ;;  %v1961_v45 = vld [vmem:[#allocation2 + $0x54] ss:$8 sps:$4 sm:$0xff]  }
  0xcf   :  { %v198_v50 = vrot.slane %v173_v46, %v180_v42  ;;  %v187_v55 = vsel %vm186_vm4, %v185_v47, %v181_v49  ;;  %v1968_v46 = vld [vmem:[#allocation6 + $0x40] ss:$8 sps:$4 sm:$0xff]   ;;  %v1976_v47 = vld [vmem:[#allocation6 + $0x54] ss:$8 sps:$4 sm:$0xff]   ;;  %v1967_v49 = vld [vmem:[#allocation2 + $0x64] ss:$8 sps:$4 sm:$0xff]  }
  0xd0   :  { %v997_v51 = vpop.xlane.xlu0 %996  ;;  %v1002_v52 = vpop.xlane.xlu1 %1001 }
  0xd1   :  { %v200_v54 = vsel %vm199_vm3, %v198_v50, %v194_v48  ;;  %v1003_v56 = vmul.f32 0.00390625, %v997_v51  ;;  %v1004_v57 = vmul.f32 0.00390625, %v1002_v52  ;;  %v1959_v48 = vld [vmem:[#allocation2 + $0x50] ss:$8 sps:$4 sm:$0xff]   ;;  %v1982_v51 = vld [vmem:[#allocation6 + $0x64] ss:$8 sps:$4 sm:$0xff]  }
  0xd2   :  { %v203_v58 = vsel %vm202_vm1, %v187_v55, %v200_v54  ;;  %v1974_v50 = vld [vmem:[#allocation6 + $0x50] ss:$8 sps:$4 sm:$0xff]   ;;  %v1965_v52 = vld [vmem:[#allocation2 + $0x60] ss:$8 sps:$4 sm:$0xff]  }
  0xd3   :  { %v1022_v59 = vrot.slane %v1003_v56, %v180_v42  ;;  %v1026_v60 = vrot.slane %v1004_v57, %v180_v42  ;;  %v204_v61 = vpack.c.bf16 %v203_v58, %v203_v58  ;;  %v1980_v54 = vld [vmem:[#allocation6 + $0x60] ss:$8 sps:$4 sm:$0xff]   ;;  %v1971_v55 = vld [vmem:[#allocation2 + $0x70] ss:$8 sps:$4 sm:$0xff]   ;;  %v1979_v56 = vld [vmem:[#allocation2 + $0x84] ss:$8 sps:$4 sm:$0xff]  }
  0xd4   :  { %v987_v63 = vpop.xlane.xlu0 %986  ;;  %v992_v3 = vpop.xlane.xlu1 %991  ;;  %v1977_v57 = vld [vmem:[#allocation2 + $0x80] ss:$8 sps:$4 sm:$0xff]  }
  0xd5   :  { %v1010_v4 = vrot.slane %v987_v63, %v180_v42  ;;  %v1014_v5 = vrot.slane %v992_v3, %v180_v42  ;;  %1893 = vmatmul.mubr.msk.bf16.vlgmr.msra.gmra.mrb[0].mxu0 %vm205_vm5, %v204_v61  ;;  %v1027_v6 = vsel %vm199_vm3, %v1026_v60, %v1022_v59  ;;  %v1962_v42 = vld [vmem:[#allocation6 + $0x30] ss:$8 sps:$4 sm:$0xff]  }
  0xd6   :  { %1897 = vmatpush3.bf16.msra.mxu0 %v258_v62  ;;  %1898 = vmatprep.mubr.msk.bf16.mxu0 %vm2227_vm2, %v2226_v33 }
  0xd7   :  { %v1015_v8 = vsel %vm186_vm4, %v1014_v5, %v1010_v4  ;;  %592 = vmatprep.subr.bf16.mxu0 %v1937_v26  ;;  %v1992_v26 = vld [vmem:[#allocation6 + $0x80] ss:$8 sps:$4 sm:$0xff]  }
  0xd8   :  { %v1029_v9 = vsel %vm202_vm1, %v1015_v8, %v1027_v6 }
  0xd9   :  { %v1030_v10 = vpack.c.bf16 %v1029_v9, %v1029_v9 }
  0xdb   :  { %1905 = vmatmul.mubr.msk.bf16.vlgmr.msra.gmra.mrb[0].mxu1 %vm205_vm5, %v1030_v10 }
  0xdc   :  { %1910 = vmatprep.mubr.msk.bf16.mxu1 %vm2227_vm2, %v2226_v33  ;;  %1909 = vmatpush3.bf16.msra.mxu1 %v1083_v12  ;;  %v1950_v33 = vld [vmem:[#allocation6 + $0x10] ss:$8 sps:$4 sm:$0xff]  }
  0xdd   :  { %1417 = vmatprep.subr.bf16.mxu1 %v1946_v29  ;;  %v1997_v29 = vld [vmem:[#allocation2 + $0xb4] ss:$8 sps:$4 sm:$0xff]  }
 0x1a8   :  { %v246_v13 = vpop.f32.mrb[0].mxu0 }
 0x1a9   :  { %v252_v14 = vmax.f32 %v246_v13, 0.0  ;;  %v1894_v15 = vpop.f32.mrb[1].mxu0 }
 0x1aa   :  { %v249_v16 = vpop.f32.mrb[2].mxu0  ;;  %v1983_v15 = vld [vmem:[#allocation2 + $0x90] ss:$8 sps:$4 sm:$0xff]  }
 0x1ab   :  { %v253_v17 = vpack.c.bf16 %v252_v14, %v252_v14  ;;  %v1895_v18 = vpop.f32.mrb[3].mxu0  ;;  %v1985_v14 = vld [vmem:[#allocation2 + $0x94] ss:$8 sps:$4 sm:$0xff]  }
 0x1ad   :  { %1899 = vmatmul.mubr.msk.bf16.vlgmr.msra.gmra.mrb[4].mxu0 %vm205_vm5, %v253_v17  ;;  %v1988_v17 = vld [vmem:[#allocation6 + $0x74] ss:$8 sps:$4 sm:$0xff]  }
 0x1ae   :  { %v1071_v19 = vpop.f32.mrb[0].mxu1  ;;  %593 = vmatpush1.bf16.msra.mxu0 %v1935_v25 }
 0x1af   :  { %v1077_v20 = vmax.f32 %v1071_v19, 0.0  ;;  %v1906_v21 = vpop.f32.mrb[1].mxu1  ;;  %594 = vmatprep.subr.bf16.mxu0 %v1940_v27  ;;  %v1986_v19 = vld [vmem:[#allocation6 + $0x70] ss:$8 sps:$4 sm:$0xff]  }
 0x1b0   :  { %v1074_v22 = vpop.f32.mrb[2].mxu1  ;;  %v1989_v21 = vld [vmem:[#allocation2 + $0xa0] ss:$8 sps:$4 sm:$0xff]  }
 0x1b1   :  { %v1078_v23 = vpack.c.bf16 %v1077_v20, %v1077_v20  ;;  %v1907_v24 = vpop.f32.mrb[3].mxu1  ;;  %v1991_v20 = vld [vmem:[#allocation2 + $0xa4] ss:$8 sps:$4 sm:$0xff]   ;;  %v2423_v22 = vsub.s32 1, %v2399_v39 }
 0x1b2   :  { %595 = vmatpush1.bf16.msra.mxu0 %v1938_v30  ;;  %v1994_v24 = vld [vmem:[#allocation6 + $0x84] ss:$8 sps:$4 sm:$0xff]   ;;  %v1995_v30 = vld [vmem:[#allocation2 + $0xb0] ss:$8 sps:$4 sm:$0xff]  }
 0x1b3   :  { %1911 = vmatmul.mubr.msk.bf16.vlgmr.msra.gmra.mrb[4].mxu1 %vm205_vm5, %v1078_v23  ;;  %596 = vmatprep.subr.bf16.mxu0 %v1943_v32  ;;  %v2426_v23 = vsub.s32 0, %v2399_v39  ;;  %v1998_v32 = vld [vmem:[#allocation6 + $0x90] ss:$8 sps:$4 sm:$0xff]  }
 0x1b4   :  { %1418 = vmatpush1.bf16.msra.mxu1 %v1944_v28 }
 0x1b5   :  { %1419 = vmatprep.subr.bf16.mxu1 %v1952_v31  ;;  %v2000_v31 = vld [vmem:[#allocation6 + $0x94] ss:$8 sps:$4 sm:$0xff]  }
 0x1b6   :  { %597 = vmatpush1.bf16.msra.mxu0 %v1941_v35 }
 0x1b7   :  { %598 = vmatprep.subr.bf16.mxu0 %v1949_v36  ;;  %v2001_v36 = vld [vmem:[#allocation2 + $0xc0] ss:$8 sps:$4 sm:$0xff]  }
 0x1b8   :  { %1420 = vmatpush1.bf16.msra.mxu1 %v1950_v33 }
 0x1b9   :  { %1421 = vmatprep.subr.bf16.mxu1 %v1958_v34  ;;  %v2003_v34 = vld [vmem:[#allocation2 + $0xc4] ss:$8 sps:$4 sm:$0xff]  }
 0x1ba   :  { %599 = vmatpush1.bf16.msra.mxu0 %v1947_v40  ;;  %v2009_v40 = vld [vmem:[#allocation2 + $0xd4] ss:$8 sps:$4 sm:$0xff]  }
 0x1bb   :  { %600 = vmatprep.subr.bf16.mxu0 %v1955_v41 }
 0x1bc   :  { %1422 = vmatpush1.bf16.msra.mxu1 %v1956_v37  ;;  %v2006_v37 = vld [vmem:[#allocation6 + $0xa4] ss:$8 sps:$4 sm:$0xff]  }
 0x1bd   :  { %1423 = vmatprep.subr.bf16.mxu1 %v1964_v38  ;;  %v2004_v38 = vld [vmem:[#allocation6 + $0xa0] ss:$8 sps:$4 sm:$0xff]  }
 0x1be   :  { %601 = vmatpush1.bf16.msra.mxu0 %v1953_v44  ;;  %v2010_v44 = vld [vmem:[#allocation6 + $0xb0] ss:$8 sps:$4 sm:$0xff]  }
 0x1bf   :  { %602 = vmatprep.subr.bf16.mxu0 %v1961_v45  ;;  %v2015_v45 = vld [vmem:[#allocation2 + $0xe4] ss:$8 sps:$4 sm:$0xff]  }
 0x1c0   :  { %1424 = vmatpush1.bf16.msra.mxu1 %v1962_v42  ;;  %v2007_v42 = vld [vmem:[#allocation2 + $0xd0] ss:$8 sps:$4 sm:$0xff]  }
 0x1c1   :  { %1425 = vmatprep.subr.bf16.mxu1 %v1970_v43  ;;  %v2012_v43 = vld [vmem:[#allocation6 + $0xb4] ss:$8 sps:$4 sm:$0xff]  }
 0x1c2   :  { %603 = vmatpush1.bf16.msra.mxu0 %v1959_v48  ;;  %v2016_v48 = vld [vmem:[#allocation6 + $0xc0] ss:$8 sps:$4 sm:$0xff]  }
 0x1c3   :  { %604 = vmatprep.subr.bf16.mxu0 %v1967_v49  ;;  %v2021_v49 = vld [vmem:[#allocation2 + $0xf4] ss:$8 sps:$4 sm:$0xff]  }
 0x1c4   :  { %1426 = vmatpush1.bf16.msra.mxu1 %v1968_v46  ;;  %v2013_v46 = vld [vmem:[#allocation2 + $0xe0] ss:$8 sps:$4 sm:$0xff]  }
 0x1c5   :  { %1427 = vmatprep.subr.bf16.mxu1 %v1976_v47  ;;  %v2018_v47 = vld [vmem:[#allocation6 + $0xc4] ss:$8 sps:$4 sm:$0xff]  }
 0x1c6   :  { %605 = vmatpush1.bf16.msra.mxu0 %v1965_v52  ;;  %v2024_v52 = vld [vmem:[#allocation6 + $0xd4] ss:$8 sps:$4 sm:$0xff]  }
 0x1c7   :  { %606 = vmatprep.subr.bf16.mxu0 %v1973_v53  ;;  %v2027_v53 = vld [vmem:[%s2604_s4 + $0x4] ss:$8 sps:$4 sm:$0xff]  }
 0x1c8   :  { %1428 = vmatpush1.bf16.msra.mxu1 %v1974_v50  ;;  %v2019_v50 = vld [vmem:[#allocation2 + $0xf0] ss:$8 sps:$4 sm:$0xff]  }
 0x1c9   :  { %1429 = vmatprep.subr.bf16.mxu1 %v1982_v51  ;;  %v2022_v51 = vld [vmem:[#allocation6 + $0xd0] ss:$8 sps:$4 sm:$0xff]  }
 0x1ca   :  { %607 = vmatpush1.bf16.msra.mxu0 %v1971_v55  ;;  %v2030_v55 = vld [vmem:[#allocation6 + $0xe4] ss:$8 sps:$4 sm:$0xff]  }
 0x1cb   :  { %608 = vmatprep.subr.bf16.mxu0 %v1979_v56  ;;  %v2034_v56 = vld [vmem:[#allocation6 + $0xf0] ss:$8 sps:$4 sm:$0xff]  }
 0x1cc   :  { %1430 = vmatpush1.bf16.msra.mxu1 %v1980_v54  ;;  %v2028_v54 = vld [vmem:[#allocation6 + $0xe0] ss:$8 sps:$4 sm:$0xff]  }
 0x1cd   :  { %1431 = vmatprep.subr.bf16.mxu1 %v1988_v17 }
 0x1ce   :  { %609 = vmatpush1.bf16.msra.mxu0 %v1977_v57  ;;  %v2036_v57 = vld [vmem:[#allocation6 + $0xf4] ss:$8 sps:$4 sm:$0xff]  }
 0x1cf   :  { %610 = vmatprep.subr.bf16.mxu0 %v1985_v14 }
 0x1d0   :  { %1432 = vmatpush1.bf16.msra.mxu1 %v1986_v19 }
 0x1d1   :  { %1433 = vmatprep.subr.bf16.mxu1 %v1994_v24 }
 0x1d2   :  { %611 = vmatpush1.bf16.msra.mxu0 %v1983_v15 }
 0x1d3   :  { %612 = vmatprep.subr.bf16.mxu0 %v1991_v20 }
 0x1d4   :  { %1434 = vmatpush1.bf16.msra.mxu1 %v1992_v26 }
 0x1d5   :  { %1435 = vmatprep.subr.bf16.mxu1 %v2000_v31 }
 0x1d6   :  { %613 = vmatpush1.bf16.msra.mxu0 %v1989_v21 }
 0x1d7   :  { %614 = vmatprep.subr.bf16.mxu0 %v1997_v29 }
 0x1d8   :  { %1436 = vmatpush1.bf16.msra.mxu1 %v1998_v32 }
 0x1d9   :  { %1437 = vmatprep.subr.bf16.mxu1 %v2006_v37 }
 0x1da   :  { %615 = vmatpush1.bf16.msra.mxu0 %v1995_v30 }
 0x1db   :  { %616 = vmatprep.subr.bf16.mxu0 %v2003_v34 }
 0x1dc   :  { %1438 = vmatpush1.bf16.msra.mxu1 %v2004_v38 }
 0x1dd   :  { %1439 = vmatprep.subr.bf16.mxu1 %v2012_v43 }
 0x1de   :  { %617 = vmatpush1.bf16.msra.mxu0 %v2001_v36 }
 0x1df   :  { %618 = vmatprep.subr.bf16.mxu0 %v2009_v40 }
 0x1e0   :  { %1440 = vmatpush1.bf16.msra.mxu1 %v2010_v44 }
 0x1e1   :  { %1441 = vmatprep.subr.bf16.mxu1 %v2018_v47 }
 0x1e2   :  { %619 = vmatpush1.bf16.msra.mxu0 %v2007_v42 }
 0x1e3   :  { %620 = vmatprep.subr.bf16.mxu0 %v2015_v45 }
 0x1e4   :  { %1442 = vmatpush1.bf16.msra.mxu1 %v2016_v48 }
 0x1e5   :  { %1443 = vmatprep.subr.bf16.mxu1 %v2024_v52 }
 0x1e6   :  { %621 = vmatpush1.bf16.msra.mxu0 %v2013_v46 }
 0x1e7   :  { %622 = vmatprep.subr.bf16.mxu0 %v2021_v49 }
 0x1e8   :  { %1444 = vmatpush1.bf16.msra.mxu1 %v2022_v51 }
 0x1e9   :  { %1445 = vmatprep.subr.bf16.mxu1 %v2030_v55 }
 0x1ea   :  { %623 = vmatpush1.bf16.msra.mxu0 %v2019_v50 }
 0x1eb   :  { %807 = vmatprep.subr.bf16.mxu0 %v2027_v53 }
 0x1ec   :  { %1446 = vmatpush1.bf16.msra.mxu1 %v2028_v54 }
 0x1ed   :  { %1447 = vmatprep.subr.bf16.mxu1 %v2036_v57 }
 0x1f0   :  { %1448 = vmatpush1.bf16.msra.mxu1 %v2034_v56 }
 0x280   :  { %v294_v58 = vpop.f32.mrb[4].mxu0 }
 0x281   :  { %v301_v59 = vrot.slane %v294_v58, 2  ;;  %v1900_v60 = vpop.f32.mrb[5].mxu0 }
 0x282   :  { %v297_v61 = vpop.f32.mrb[6].mxu0 }
 0x283   :  { %v303_v62 = vadd.f32 %v301_v59, %v294_v58  ;;  %v1901_v63 = vpop.f32.mrb[7].mxu0  ;;  %v2042_v58 = vld [vmem:[#allocation4 + $0x4] ss:$8 sps:$4 sm:$0xff]   ;;  %v2228_v59 = vmov 839922192  }
 0x284   :  { %1632 = vmatprep.subr.bf16.mxu1 %v2042_v58  ;;  %v327_v60 = vunpack.c.l.s4 %v2228_v59 }
 0x285   :  { %v1746_v3 = vmul.f32 -1.442695, %v303_v62 }
 0x286   :  { %v1119_v4 = vpop.f32.mrb[4].mxu1  ;;  %v328_v61 = vunpack.c.0.s8 %v327_v60 }
 0x287   :  { %2127 = vpow2.f32 %v1746_v3  ;;  %v1126_v5 = vrot.slane %v1119_v4, 2  ;;  %v1912_v6 = vpop.f32.mrb[5].mxu1 }
 0x288   :  { %v1122_v8 = vpop.f32.mrb[6].mxu1  ;;  %v331_v62 = vsub.s32 %v328_v61, %v2399_v39 }
 0x289   :  { %v1128_v9 = vadd.f32 %v1126_v5, %v1119_v4  ;;  %v1913_v10 = vpop.f32.mrb[7].mxu1 }
 0x28b   :  { %v1815_v11 = vmul.f32 -1.442695, %v1128_v9 }
 0x28d   :  { %2129 = vpow2.f32 %v1815_v11 }
 0x291   :  { %v2128_v12 = vpop.eup %2127 }
 0x292   :  { %v307_v13 = vadd.f32 1.0, %v2128_v12 }
 0x294   :  { %2131 = vrcp.f32 %v307_v13 }
 0x297   :  { %v2130_v16 = vpop.eup %2129 }
 0x298   :  { %v1132_v18 = vadd.f32 1.0, %v2130_v16 }
 0x29a   :  { %2133 = vrcp.f32 %v1132_v18 }
 0x29e   :  { %v2132_v25 = vpop.eup %2131 }
 0x29f   :  { %v320_v27 = vrot.slane %v2132_v25, %v2423_v22  ;;  %v313_v28 = vrot.slane %v2132_v25, %v2426_v23 }
 0x2a1   :  { %322 = vbcast.lane.b32.xlu1 %v320_v27, 256  ;;  %315 = vbcast.lane.b32.xlu0 %v313_v28, 256 }
 0x2a4   :  { %v2134_v33 = vpop.eup %2133 }
 0x2a5   :  { %v1138_v35 = vrot.slane %v2134_v33, %v2426_v23  ;;  %v1145_v41 = vrot.slane %v2134_v33, %v2423_v22 }
 0x2a7   :  { %1140 = vbcast.lane.b32.xlu1 %v1138_v35, 256 }
 0x2ab   :  { %1147 = vbcast.lane.b32.xlu1 %v1145_v41, 256 }
 0x313   :  { %v316_v63 = vpop.permute.xlu0 %315  ;;  %v323_v3 = vpop.permute.xlu1 %322 }
 0x314   :  { %v332_v4 = vrot.slane %v316_v63, %v331_v62  ;;  %v339_v5 = vrot.slane %v323_v3, %v331_v62 }
 0x316   :  { %v2437_v6 = vmul.f32 %v332_v4, %v2340_v0  ;;  %v2440_v8 = vmul.f32 %v339_v5, %v2345_v1 }
 0x318   :  { %v346_v9 = vcombine.high %v2437_v6, %v2437_v6  ;;  %v382_v10 = vsel %vm151_vm0, %v2437_v6, 0.0  ;;  %v347_v11 = vcombine.high %v2440_v8, %v2440_v8  ;;  %v396_v13 = vsel %vm151_vm0, %v2440_v8, 0.0 }
 0x319   :  { %v383_v12 = vrot.slane %v382_v10, 4  ;;  %v1141_v14 = vpop.permute.xlu1 %1140  ;;  %v397_v1 = vrot.slane %v396_v13, 4 }
 0x31a   :  { %v389_v0 = vsel %vm151_vm0, %v346_v9, 0.0  ;;  %v403_v17 = vsel %vm151_vm0, %v347_v11, 0.0  ;;  %v357_v18 = vsel %vm151_vm0, %v346_v9, -inf  ;;  %v371_v21 = vsel %vm151_vm0, %v347_v11, -inf }
 0x31b   :  { %v384_v15 = vadd.f32 %v383_v12, %v382_v10  ;;  %v390_v16 = vrot.slane %v389_v0, 4  ;;  %v398_v24 = vadd.f32 %v397_v1, %v396_v13  ;;  %v404_v25 = vrot.slane %v403_v17, 4 }
 0x31c   :  { %v1157_v27 = vrot.slane %v1141_v14, %v331_v62  ;;  %v358_v29 = vrot.slane %v357_v18, 4  ;;  %v372_v31 = vrot.slane %v371_v21, 4 }
 0x31d   :  { %v391_v19 = vadd.f32 %v390_v16, %v389_v0  ;;  %v1148_v20 = vpop.permute.xlu1 %1147  ;;  %v385_v26 = vrot.slane %v384_v15, 2  ;;  %v399_v30 = vrot.slane %v398_v24, 2  ;;  %v405_v35 = vadd.f32 %v404_v25, %v403_v17 }
 0x31e   :  { %v1164_v28 = vrot.slane %v1148_v20, %v331_v62  ;;  %v2455_v32 = vmul.f32 %v1157_v27, %v2350_v2  ;;  %v359_v41 = vmax.f32 %v357_v18, %v358_v29  ;;  %v373_v2 = vmax.f32 %v371_v21, %v372_v31 }
 0x31f   :  { %v392_v34 = vrot.slane %v391_v19, 2  ;;  %v386_v36 = vadd.f32 %v385_v26, %v384_v15  ;;  %v400_v42 = vadd.f32 %v399_v30, %v398_v24  ;;  %v406_v49 = vrot.slane %v405_v35, 2 }
 0x320   :  { %v2458_v33 = vmul.f32 %v1164_v28, %v2363_v7  ;;  %v1171_v37 = vcombine.high %v2455_v32, %v2455_v32  ;;  %v1207_v38 = vsel %vm151_vm0, %v2455_v32, 0.0  ;;  %v360_v56 = vrot.slane %v359_v41, 2 }
 0x321   :  { %v1208_v43 = vrot.slane %v1207_v38, 4  ;;  %v393_v45 = vadd.f32 %v392_v34, %v391_v19  ;;  %v387_v50 = vrot.slane %v386_v36, 1  ;;  %v401_v54 = vrot.slane %v400_v42, 1 }
 0x322   :  { %v1172_v40 = vcombine.high %v2458_v33, %v2458_v33  ;;  %v1182_v44 = vsel %vm151_vm0, %v1171_v37, -inf  ;;  %v1214_v7 = vsel %vm151_vm0, %v1171_v37, 0.0  ;;  %v1221_v52 = vsel %vm151_vm0, %v2458_v33, 0.0 }
 0x323   :  { %v1209_v46 = vadd.f32 %v1208_v43, %v1207_v38  ;;  %v1215_v47 = vrot.slane %v1214_v7, 4  ;;  %v1183_v51 = vrot.slane %v1182_v44, 4  ;;  %v1222_v58 = vrot.slane %v1221_v52, 4 }
 0x324   :  { %v1196_v48 = vsel %vm151_vm0, %v1172_v40, -inf  ;;  %v1228_v53 = vsel %vm151_vm0, %v1172_v40, 0.0  ;;  %v374_v60 = vrot.slane %v373_v2, 2  ;;  %v394_v63 = vrot.slane %v393_v45, 1 }
 0x325   :  { %v1210_v55 = vrot.slane %v1209_v46, 2  ;;  %v1197_v57 = vrot.slane %v1196_v48, 4  ;;  %v1229_v59 = vrot.slane %v1228_v53, 4  ;;  %v1216_v62 = vadd.f32 %v1215_v47, %v1214_v7 }
 0x326   :  { %v407_v3 = vadd.f32 %v406_v49, %v405_v35  ;;  %v1184_v4 = vmax.f32 %v1182_v44, %v1183_v51  ;;  %v1223_v5 = vadd.f32 %v1222_v58, %v1221_v52  ;;  %v388_v10 = vadd.f32 %v387_v50, %v386_v36 }
 0x327   :  { %v1211_v61 = vadd.f32 %v1210_v55, %v1209_v46  ;;  %v1230_v9 = vadd.f32 %v1229_v59, %v1228_v53  ;;  %v395_v12 = vadd.f32 %v394_v63, %v393_v45  ;;  %v402_v14 = vadd.f32 %v401_v54, %v400_v42  ;;  %v2025_v59 = vld [vmem:[%s2604_s4] ss:$8 sps:$4 sm:$0xff]  }
 0x328   :  { %v408_v13 = vrot.slane %v407_v3, 1  ;;  %v1224_v0 = vrot.slane %v1223_v5, 2  ;;  %v410_v15 = vmul.f32 0.25, %v388_v10  ;;  %v361_v16 = vmax.f32 %v359_v41, %v360_v56 }
 0x329   :  { %v1212_v11 = vrot.slane %v1211_v61, 1  ;;  %v375_v1 = vmax.f32 %v373_v2, %v374_v60  ;;  %v411_v18 = vmul.f32 0.25, %v395_v12  ;;  %v412_v19 = vmul.f32 0.25, %v402_v14  ;;  %v2031_v12 = vld [vmem:[%s2604_s4 + $0x10] ss:$8 sps:$4 sm:$0xff]  }
 0x32a   :  { %v409_v17 = vadd.f32 %v408_v13, %v407_v3  ;;  %v1217_v20 = vrot.slane %v1216_v62, 2  ;;  %v1225_v21 = vadd.f32 %v1224_v0, %v1223_v5  ;;  %v414_v24 = vpack.c.bf16 %v410_v15, %v410_v15 }
 0x32b   :  { %v362_v25 = vrot.slane %v361_v16, 1  ;;  %v376_v26 = vrot.slane %v375_v1, 1  ;;  %v415_v28 = vpack.c.bf16 %v411_v18, %v411_v18  ;;  %v416_v29 = vpack.c.bf16 %v412_v19, %v412_v19 }
 0x32c   :  { %v413_v27 = vmul.f32 0.25, %v409_v17  ;;  %v1218_v30 = vadd.f32 %v1217_v20, %v1216_v62  ;;  %v1226_v31 = vrot.slane %v1225_v21, 1  ;;  %v422_v34 = vunpack.c.l.b16 %v414_v24  ;;  %v2033_v62 = vld [vmem:[%s2604_s4 + $0x14] ss:$8 sps:$4 sm:$0xff]   ;;  %v2037_v20 = vld [vmem:[%s2604_s4 + $0x20] ss:$8 sps:$4 sm:$0xff]  }
 0x32d   :  { %v363_v35 = vmax.f32 %v361_v16, %v362_v25  ;;  %v377_v36 = vmax.f32 %v375_v1, %v376_v26  ;;  %v423_v38 = vunpack.c.l.b16 %v415_v28  ;;  %v424_v40 = vunpack.c.l.b16 %v416_v29  ;;  %v2039_v16 = vld [vmem:[%s2604_s4 + $0x24] ss:$8 sps:$4 sm:$0xff]   ;;  %v2045_v28 = vld [vmem:[%s2604_s4 + $0x34] ss:$8 sps:$4 sm:$0xff]  }
 0x32e   :  { %v417_v37 = vpack.c.bf16 %v413_v27, %v413_v27  ;;  %v1219_v41 = vrot.slane %v1218_v30, 1  ;;  %v1231_v2 = vrot.slane %v1230_v9, 2  ;;  %v1213_v44 = vadd.f32 %v1212_v11, %v1211_v61 }
 0x32f   :  { %v379_v42 = vpack.c.bf16 %v363_v35, %v363_v35  ;;  %v381_v43 = vpack.c.bf16 %v377_v36, %v377_v36  ;;  %v1198_v7 = vmax.f32 %v1196_v48, %v1197_v57  ;;  %v1227_v47 = vadd.f32 %v1226_v31, %v1225_v21  ;;  %v2043_v36 = vld [vmem:[%s2604_s4 + $0x30] ss:$8 sps:$4 sm:$0xff]  }
 0x330   :  { %v425_v45 = vunpack.c.l.b16 %v417_v37  ;;  %v1220_v46 = vadd.f32 %v1219_v41, %v1218_v30  ;;  %v426_v49 = vsel %vm186_vm4, %v424_v40, %v422_v34  ;;  %v1232_v52 = vadd.f32 %v1231_v2, %v1230_v9  ;;  %v2040_v34 = vld [vmem:[#allocation4] ss:$8 sps:$4 sm:$0xff]   ;;  %v2048_v40 = vld [vmem:[#allocation4 + $0x14] ss:$8 sps:$4 sm:$0xff]   ;;  %v2051_v41 = vld [vmem:[%s2604_s4 + $0x44] ss:$8 sps:$4 sm:$0xff]  }
 0x331   :  { %v638_v50 = vunpack.c.l.b16 %v379_v42  ;;  %v640_v51 = vunpack.c.l.b16 %v381_v43  ;;  %v1235_v55 = vmul.f32 0.25, %v1213_v44  ;;  %v1237_v56 = vmul.f32 0.25, %v1227_v47  ;;  %v2046_v2 = vld [vmem:[#allocation4 + $0x10] ss:$8 sps:$4 sm:$0xff]   ;;  %v2049_v44 = vld [vmem:[%s2604_s4 + $0x40] ss:$8 sps:$4 sm:$0xff]  }
 0x332   :  { %v427_v53 = vsel %vm186_vm4, %v425_v45, %v423_v38  ;;  %v1236_v54 = vmul.f32 0.25, %v1220_v46  ;;  %v1233_v57 = vrot.slane %v1232_v52, 1  ;;  %v1185_v60 = vrot.slane %v1184_v4, 2  ;;  %v2057_v45 = vld [vmem:[%s2604_s4 + $0x54] ss:$8 sps:$4 sm:$0xff]  }
 0x333   :  { %v429_v58 = vpack.c.b16 %v427_v53, %v427_v53  ;;  %v642_v48 = vsel %vm186_vm4, %v640_v51, %v638_v50  ;;  %v428_v61 = vpack.c.b16 %v426_v49, %v426_v49  ;;  %v1241_v63 = vpack.c.bf16 %v1237_v56, %v1237_v56  ;;  %v2052_v46 = vld [vmem:[#allocation4 + $0x20] ss:$8 sps:$4 sm:$0xff]   ;;  %v2055_v47 = vld [vmem:[%s2604_s4 + $0x50] ss:$8 sps:$4 sm:$0xff]   ;;  %v2060_v49 = vld [vmem:[#allocation4 + $0x34] ss:$8 sps:$4 sm:$0xff]  }
 0x334   :  { %v644_v3 = vpack.c.b16 %v642_v48, %v642_v48  ;;  %v1234_v5 = vadd.f32 %v1233_v57, %v1232_v52  ;;  %v1186_v9 = vmax.f32 %v1184_v4, %v1185_v60  ;;  %v1199_v10 = vrot.slane %v1198_v7, 2  ;;  %v2063_v50 = vld [vmem:[%s2604_s4 + $0x64] ss:$8 sps:$4 sm:$0xff]   ;;  %v2058_v51 = vld [vmem:[#allocation4 + $0x30] ss:$8 sps:$4 sm:$0xff]  }
 0x335   :  { %624 = vmatprep.mubr.bf16.mxu0 %v429_v58  ;;  %v1239_v11 = vpack.c.bf16 %v1235_v55, %v1235_v55  ;;  %v1240_v14 = vpack.c.bf16 %v1236_v54, %v1236_v54  ;;  %v1249_v1 = vunpack.c.l.b16 %v1241_v63  ;;  %v2061_v52 = vld [vmem:[%s2604_s4 + $0x60] ss:$8 sps:$4 sm:$0xff]   ;;  %v2066_v53 = vld [vmem:[#allocation4 + $0x44] ss:$8 sps:$4 sm:$0xff]   ;;  %v2069_v54 = vld [vmem:[%s2604_s4 + $0x74] ss:$8 sps:$4 sm:$0xff]  }
 0x336   :  { %625 = vmatmul.mubr.bf16.vlgmr.msra.gmra.mrb[8].mxu0 %v428_v61  ;;  %v1238_v13 = vmul.f32 0.25, %v1234_v5  ;;  %v1187_v0 = vrot.slane %v1186_v9, 1  ;;  %v1200_v15 = vmax.f32 %v1198_v7, %v1199_v10  ;;  %v2054_v7 = vld [vmem:[#allocation4 + $0x24] ss:$8 sps:$4 sm:$0xff]   ;;  %v350_v55 = vsel %vm151_vm0, %v2437_v6, -inf }
 0x337   :  { %808 = vmatpush1.bf16.msra.mxu0 %v2025_v59  ;;  %839 = vmatprep.mubr.bf16.mxu0 %v644_v3  ;;  %v1247_v19 = vunpack.c.l.b16 %v1239_v11  ;;  %v1248_v21 = vunpack.c.l.b16 %v1240_v14  ;;  %v364_v56 = vsel %vm151_vm0, %v2440_v8, -inf  ;;  %v2064_v58 = vld [vmem:[#allocation4 + $0x40] ss:$8 sps:$4 sm:$0xff]   ;;  %v2067_v59 = vld [vmem:[%s2604_s4 + $0x70] ss:$8 sps:$4 sm:$0xff]   ;;  %v351_v60 = vrot.slane %v350_v55, 4 }
 0x338   :  { %809 = vmatprep.subr.bf16.mxu0 %v2033_v62  ;;  %v1242_v4 = vpack.c.bf16 %v1238_v13, %v1238_v13  ;;  %v1188_v17 = vmax.f32 %v1186_v9, %v1187_v0  ;;  %v1201_v18 = vrot.slane %v1200_v15, 1  ;;  %v2072_v48 = vld [vmem:[#allocation4 + $0x54] ss:$8 sps:$4 sm:$0xff]   ;;  %v2075_v57 = vld [vmem:[%s2604_s4 + $0x84] ss:$8 sps:$4 sm:$0xff]   ;;  %v365_v61 = vrot.slane %v364_v56, 4 }
 0x339   :  { %v1251_v27 = vsel %vm186_vm4, %v1249_v1, %v1247_v19  ;;  %v2070_v62 = vld [vmem:[#allocation4 + $0x50] ss:$8 sps:$4 sm:$0xff]   ;;  %v2073_v63 = vld [vmem:[%s2604_s4 + $0x80] ss:$8 sps:$4 sm:$0xff]   ;;  %v2078_v3 = vld [vmem:[#allocation4 + $0x64] ss:$8 sps:$4 sm:$0xff]   ;;  %v352_v9 = vmax.f32 %v350_v55, %v351_v60 }
 0x33a   :  { %v1250_v24 = vunpack.c.l.b16 %v1242_v4  ;;  %v1202_v25 = vmax.f32 %v1200_v15, %v1201_v18  ;;  %v1204_v26 = vpack.c.bf16 %v1188_v17, %v1188_v17  ;;  %v1253_v35 = vpack.c.b16 %v1251_v27, %v1251_v27  ;;  %v2081_v5 = vld [vmem:[%s2604_s4 + $0x94] ss:$8 sps:$4 sm:$0xff]   ;;  %v2076_v11 = vld [vmem:[#allocation4 + $0x60] ss:$8 sps:$4 sm:$0xff]   ;;  %v2087_v14 = vld [vmem:[%s2604_s4 + $0xa4] ss:$8 sps:$4 sm:$0xff]  }
 0x33b   :  { %810 = vmatpush1.bf16.msra.mxu0 %v2031_v12  ;;  %v366_v10 = vmax.f32 %v364_v56, %v365_v61  ;;  %v2079_v12 = vld [vmem:[%s2604_s4 + $0x90] ss:$8 sps:$4 sm:$0xff]   ;;  %v2084_v13 = vld [vmem:[#allocation4 + $0x74] ss:$8 sps:$4 sm:$0xff]   ;;  %v353_v0 = vrot.slane %v352_v9, 2  ;;  %v1175_v4 = vsel %vm151_vm0, %v2455_v32, -inf }
 0x33c   :  { %811 = vmatprep.subr.bf16.mxu0 %v2039_v16  ;;  %v1252_v29 = vsel %vm186_vm4, %v1250_v24, %v1248_v21  ;;  %v1206_v30 = vpack.c.bf16 %v1202_v25, %v1202_v25  ;;  %v1463_v37 = vunpack.c.l.b16 %v1204_v26  ;;  %v1189_v16 = vsel %vm151_vm0, %v2458_v33, -inf  ;;  %v2082_v1 = vld [vmem:[#allocation4 + $0x70] ss:$8 sps:$4 sm:$0xff]   ;;  %v2085_v17 = vld [vmem:[%s2604_s4 + $0xa0] ss:$8 sps:$4 sm:$0xff]  }
 0x33d   :  { %v1254_v31 = vpack.c.b16 %v1252_v29, %v1252_v29  ;;  %v367_v15 = vrot.slane %v366_v10, 2  ;;  %v2090_v18 = vld [vmem:[#allocation4 + $0x84] ss:$8 sps:$4 sm:$0xff]   ;;  %v1190_v19 = vrot.slane %v1189_v16, 4  ;;  %v354_v21 = vmax.f32 %v352_v9, %v353_v0  ;;  %v2088_v26 = vld [vmem:[#allocation4 + $0x80] ss:$8 sps:$4 sm:$0xff]  }
 0x33e   :  { %v1465_v38 = vunpack.c.l.b16 %v1206_v30  ;;  %v1176_v25 = vrot.slane %v1175_v4, 4  ;;  %v2091_v27 = vld [vmem:[%s2604_s4 + $0xb0] ss:$8 sps:$4 sm:$0xff]   ;;  %v2099_v30 = vld [vmem:[%s2604_s4 + $0xc4] ss:$8 sps:$4 sm:$0xff]  }
 0x33f   :  { %812 = vmatpush1.bf16.msra.mxu0 %v2037_v20  ;;  %1449 = vmatprep.mubr.bf16.mxu1 %v1254_v31  ;;  %v2093_v20 = vld [vmem:[%s2604_s4 + $0xb4] ss:$8 sps:$4 sm:$0xff]   ;;  %v368_v24 = vmax.f32 %v366_v10, %v367_v15  ;;  %v1191_v29 = vmax.f32 %v1189_v16, %v1190_v19  ;;  %v355_v31 = vrot.slane %v354_v21, 1  ;;  %v2115_v60 = vld [vmem:[%s2604_s4 + $0xf0] ss:$8 sps:$4 sm:$0xff]  }
 0x340   :  { %813 = vmatprep.subr.bf16.mxu0 %v2045_v28  ;;  %1450 = vmatmul.mubr.bf16.vlgmr.msra.gmra.mrb[8].mxu1 %v1253_v35  ;;  %v1467_v42 = vsel %vm186_vm4, %v1465_v38, %v1463_v37  ;;  %v2096_v28 = vld [vmem:[#allocation4 + $0x94] ss:$8 sps:$4 sm:$0xff]   ;;  %v1177_v35 = vmax.f32 %v1175_v4, %v1176_v25  ;;  %v2097_v37 = vld [vmem:[%s2604_s4 + $0xc0] ss:$8 sps:$4 sm:$0xff]   ;;  %v2102_v38 = vld [vmem:[#allocation4 + $0xa4] ss:$8 sps:$4 sm:$0xff]  }
 0x341   :  { %1633 = vmatpush1.bf16.msra.mxu1 %v2040_v34  ;;  %v1469_v43 = vpack.c.b16 %v1467_v42, %v1467_v42  ;;  %v369_v34 = vrot.slane %v368_v24, 1  ;;  %v356_v42 = vmax.f32 %v354_v21, %v355_v31  ;;  %v2117_v55 = vld [vmem:[%s2604_s4 + $0xf4] ss:$8 sps:$4 sm:$0xff]   ;;  %v2123_v9 = vld [vmem:[#allocation4 + $0xe4] ss:$8 sps:$4 sm:$0xff]  }
 0x342   :  { %1634 = vmatprep.subr.bf16.mxu1 %v2048_v40  ;;  %v1192_v40 = vrot.slane %v1191_v29, 2  ;;  %v2120_v61 = vld [vmem:[#allocation4 + $0xd4] ss:$8 sps:$4 sm:$0xff]   ;;  %v2124_v15 = vld [vmem:[#allocation4 + $0xf0] ss:$8 sps:$4 sm:$0xff]  }
 0x343   :  { %814 = vmatpush1.bf16.msra.mxu0 %v2043_v36  ;;  %1664 = vmatprep.mubr.bf16.mxu1 %v1469_v43  ;;  %v2094_v36 = vld [vmem:[#allocation4 + $0x90] ss:$8 sps:$4 sm:$0xff]   ;;  %v370_v43 = vmax.f32 %v368_v24, %v369_v34 }
 0x344   :  { %815 = vmatprep.subr.bf16.mxu0 %v2051_v41  ;;  %v2105_v41 = vld [vmem:[%s2604_s4 + $0xd4] ss:$8 sps:$4 sm:$0xff]  }
 0x345   :  { %1635 = vmatpush1.bf16.msra.mxu1 %v2046_v2  ;;  %v1178_v2 = vrot.slane %v1177_v35, 2 }
 0x346   :  { %1636 = vmatprep.subr.bf16.mxu1 %v2054_v7  ;;  %v2103_v7 = vld [vmem:[%s2604_s4 + $0xd0] ss:$8 sps:$4 sm:$0xff]  }
 0x347   :  { %816 = vmatpush1.bf16.msra.mxu0 %v2049_v44  ;;  %v2100_v44 = vld [vmem:[#allocation4 + $0xa0] ss:$8 sps:$4 sm:$0xff]  }
 0x348   :  { %817 = vmatprep.subr.bf16.mxu0 %v2057_v45  ;;  %v2108_v45 = vld [vmem:[#allocation4 + $0xb4] ss:$8 sps:$4 sm:$0xff]  }
 0x349   :  { %1637 = vmatpush1.bf16.msra.mxu1 %v2052_v46  ;;  %v1193_v46 = vmax.f32 %v1191_v29, %v1192_v40 }
 0x34a   :  { %1638 = vmatprep.subr.bf16.mxu1 %v2060_v49  ;;  %v378_v49 = vpack.c.bf16 %v356_v42, %v356_v42 }
 0x34b   :  { %818 = vmatpush1.bf16.msra.mxu0 %v2055_v47  ;;  %v2111_v47 = vld [vmem:[%s2604_s4 + $0xe4] ss:$8 sps:$4 sm:$0xff]   ;;  %v1194_v56 = vrot.slane %v1193_v46, 1 }
 0x34c   :  { %819 = vmatprep.subr.bf16.mxu0 %v2063_v50  ;;  %v380_v50 = vpack.c.bf16 %v370_v43, %v370_v43 }
 0x34d   :  { %1639 = vmatpush1.bf16.msra.mxu1 %v2058_v51  ;;  %v1179_v51 = vmax.f32 %v1177_v35, %v1178_v2 }
 0x34e   :  { %1640 = vmatprep.subr.bf16.mxu1 %v2066_v53  ;;  %v2109_v53 = vld [vmem:[%s2604_s4 + $0xe0] ss:$8 sps:$4 sm:$0xff]  }
 0x34f   :  { %820 = vmatpush1.bf16.msra.mxu0 %v2061_v52  ;;  %v2106_v52 = vld [vmem:[#allocation4 + $0xb0] ss:$8 sps:$4 sm:$0xff]  }
 0x350   :  { %821 = vmatprep.subr.bf16.mxu0 %v2069_v54  ;;  %v2114_v54 = vld [vmem:[#allocation4 + $0xc4] ss:$8 sps:$4 sm:$0xff]  }
 0x351   :  { %1641 = vmatpush1.bf16.msra.mxu1 %v2064_v58  ;;  %v637_v58 = vunpack.c.l.b16 %v378_v49 }
 0x352   :  { %1642 = vmatprep.subr.bf16.mxu1 %v2072_v48  ;;  %v2112_v48 = vld [vmem:[#allocation4 + $0xc0] ss:$8 sps:$4 sm:$0xff]  }
 0x353   :  { %822 = vmatpush1.bf16.msra.mxu0 %v2067_v59  ;;  %v639_v59 = vunpack.c.l.b16 %v380_v50 }
 0x354   :  { %823 = vmatprep.subr.bf16.mxu0 %v2075_v57  ;;  %v1180_v57 = vrot.slane %v1179_v51, 1 }
 0x355   :  { %1643 = vmatpush1.bf16.msra.mxu1 %v2070_v62  ;;  %v1195_v62 = vmax.f32 %v1193_v46, %v1194_v56 }
 0x356   :  { %1644 = vmatprep.subr.bf16.mxu1 %v2078_v3  ;;  %v2118_v3 = vld [vmem:[#allocation4 + $0xd0] ss:$8 sps:$4 sm:$0xff]  }
 0x357   :  { %824 = vmatpush1.bf16.msra.mxu0 %v2073_v63  ;;  %v641_v63 = vsel %vm186_vm4, %v639_v59, %v637_v58 }
 0x358   :  { %825 = vmatprep.subr.bf16.mxu0 %v2081_v5  ;;  %v1181_v5 = vmax.f32 %v1179_v51, %v1180_v57  ;;  %v643_v10 = vpack.c.b16 %v641_v63, %v641_v63 }
 0x359   :  { %1645 = vmatpush1.bf16.msra.mxu1 %v2076_v11  ;;  %v1205_v11 = vpack.c.bf16 %v1195_v62, %v1195_v62 }
 0x35a   :  { %1646 = vmatprep.subr.bf16.mxu1 %v2084_v13  ;;  %v1203_v13 = vpack.c.bf16 %v1181_v5, %v1181_v5 }
 0x35b   :  { %826 = vmatpush1.bf16.msra.mxu0 %v2079_v12  ;;  %v2121_v12 = vld [vmem:[#allocation4 + $0xe0] ss:$8 sps:$4 sm:$0xff]   ;;  %v1464_v0 = vunpack.c.l.b16 %v1205_v11 }
 0x35c   :  { %827 = vmatprep.subr.bf16.mxu0 %v2087_v14  ;;  %v2126_v14 = vld [vmem:[#allocation4 + $0xf4] ss:$8 sps:$4 sm:$0xff]   ;;  %v1462_v16 = vunpack.c.l.b16 %v1203_v13 }
 0x35d   :  { %1647 = vmatpush1.bf16.msra.mxu1 %v2082_v1 }
 0x35e   :  { %1648 = vmatprep.subr.bf16.mxu1 %v2090_v18  ;;  %v1466_v1 = vsel %vm186_vm4, %v1464_v0, %v1462_v16 }
 0x35f   :  { %828 = vmatpush1.bf16.msra.mxu0 %v2085_v17  ;;  %v1468_v4 = vpack.c.b16 %v1466_v1, %v1466_v1 }
 0x360   :  { %829 = vmatprep.subr.bf16.mxu0 %v2093_v20 }
 0x361   :  { %1649 = vmatpush1.bf16.msra.mxu1 %v2088_v26 }
 0x362   :  { %1650 = vmatprep.subr.bf16.mxu1 %v2096_v28 }
 0x363   :  { %830 = vmatpush1.bf16.msra.mxu0 %v2091_v27 }
 0x364   :  { %831 = vmatprep.subr.bf16.mxu0 %v2099_v30 }
 0x365   :  { %1651 = vmatpush1.bf16.msra.mxu1 %v2094_v36 }
 0x366   :  { %1652 = vmatprep.subr.bf16.mxu1 %v2102_v38 }
 0x367   :  { %832 = vmatpush1.bf16.msra.mxu0 %v2097_v37  ;;  %v2229_v37 = vmov 1966171168  }
 0x368   :  { %833 = vmatprep.subr.bf16.mxu0 %v2105_v41  ;;  %v864_v38 = vunpack.c.l.s4 %v2229_v37 }
 0x369   :  { %1653 = vmatpush1.bf16.msra.mxu1 %v2100_v44 }
 0x36a   :  { %1654 = vmatprep.subr.bf16.mxu1 %v2108_v45  ;;  %v865_v40 = vunpack.c.0.s8 %v864_v38 }
 0x36b   :  { %834 = vmatpush1.bf16.msra.mxu0 %v2103_v7 }
 0x36c   :  { %835 = vmatprep.subr.bf16.mxu0 %v2111_v47  ;;  %v868_v45 = vsub.s32 %v865_v40, %v2399_v39 }
 0x36d   :  { %1655 = vmatpush1.bf16.msra.mxu1 %v2106_v52 }
 0x36e   :  { %1656 = vmatprep.subr.bf16.mxu1 %v2114_v54 }
 0x36f   :  { %836 = vmatpush1.bf16.msra.mxu0 %v2109_v53 }
 0x370   :  { %837 = vmatprep.subr.bf16.mxu0 %v2117_v55 }
 0x371   :  { %1657 = vmatpush1.bf16.msra.mxu1 %v2112_v48 }
 0x372   :  { %1658 = vmatprep.subr.bf16.mxu1 %v2120_v61 }
 0x373   :  { %838 = vmatpush1.bf16.msra.mxu0 %v2115_v60 }
 0x375   :  { %1659 = vmatpush1.bf16.msra.mxu1 %v2118_v3 }
 0x376   :  { %840 = vmatmul.mubr.bf16.vlgmr.msra.gmra.mrb[8].mxu0 %v643_v10  ;;  %1660 = vmatprep.subr.bf16.mxu1 %v2123_v9 }
 0x379   :  { %1661 = vmatpush1.bf16.msra.mxu1 %v2121_v12 }
 0x37a   :  { %1662 = vmatprep.subr.bf16.mxu1 %v2126_v14 }
 0x37d   :  { %1663 = vmatpush1.bf16.msra.mxu1 %v2124_v15 }
 0x380   :  { %1665 = vmatmul.mubr.bf16.vlgmr.msra.gmra.mrb[8].mxu1 %v1468_v4 }
 0x449   :  { %v841_v17 = vpop.f32.mrb[8].mxu0 }
 0x44a   :  { %v1811_v18 = vmul.f32 -1.442695, %v841_v17  ;;  %v843_v19 = vpop.f32.mrb[9].mxu0 }
 0x44b   :  { %v1812_v20 = vmul.f32 -1.442695, %v843_v19  ;;  %v845_v21 = vpop.f32.mrb[10].mxu0 }
 0x44c   :  { %2135 = vpow2.f32 %v1811_v18  ;;  %v846_v24 = vpop.f32.mrb[11].mxu0 }
 0x44d   :  { %2137 = vpow2.f32 %v1812_v20 }
 0x453   :  { %v1666_v25 = vpop.f32.mrb[8].mxu1 }
 0x454   :  { %v1880_v26 = vmul.f32 -1.442695, %v1666_v25  ;;  %v1668_v27 = vpop.f32.mrb[9].mxu1 }
 0x455   :  { %v1881_v29 = vmul.f32 -1.442695, %v1668_v27  ;;  %v1670_v30 = vpop.f32.mrb[10].mxu1 }
 0x456   :  { %v2136_v28 = vpop.eup %2135  ;;  %2139 = vpow2.f32 %v1880_v26  ;;  %v1671_v35 = vpop.f32.mrb[11].mxu1 }
 0x457   :  { %v2138_v31 = vpop.eup %2137  ;;  %v854_v34 = vadd.f32 1.0, %v2136_v28  ;;  %2141 = vpow2.f32 %v1881_v29 }
 0x458   :  { %v855_v36 = vadd.f32 1.0, %v2138_v31 }
 0x459   :  { %2143 = vrcp.f32 %v854_v34 }
 0x45a   :  { %2145 = vrcp.f32 %v855_v36 }
 0x460   :  { %v2140_v41 = vpop.eup %2139 }
 0x461   :  { %v2142_v42 = vpop.eup %2141  ;;  %v1679_v43 = vadd.f32 1.0, %v2140_v41 }
 0x462   :  { %v1680_v44 = vadd.f32 1.0, %v2142_v42 }
 0x463   :  { %v2144_v2 = vpop.eup %2143  ;;  %2147 = vrcp.f32 %v1679_v43 }
 0x464   :  { %v2146_v7 = vpop.eup %2145  ;;  %2149 = vrcp.f32 %v1680_v44 }
 0x465   :  { %v862_v46 = vcombine.low %v2144_v2, %v2146_v7 }
 0x467   :  { %v869_v47 = vrot.slane %v862_v46, %v868_v45 }
 0x469   :  { %v870_v49 = vcombine.high %v869_v47, %v869_v47  ;;  %v877_v51 = vrot.slane %v869_v47, %v868_v45 }
 0x46b   :  { %v884_v53 = vrot.slane %v870_v49, %v868_v45  ;;  %v888_v55 = vrot.slane %v877_v51, %v2426_v23  ;;  %v892_v56 = vrot.slane %v877_v51, %v2423_v22 }
 0x46d   :  { %v2148_v50 = vpop.eup %2147  ;;  %v896_v59 = vrot.slane %v884_v53, %v2426_v23  ;;  %v900_v48 = vrot.slane %v884_v53, %v2423_v22  ;;  %v901_v60 = vcombine.low %v888_v55, %v892_v56 }
 0x46e   :  { %v2150_v52 = vpop.eup %2149 }
 0x46f   :  { %v1687_v54 = vcombine.low %v2148_v50, %v2150_v52  ;;  %v902_v3 = vcombine.low %v896_v59, %v900_v48  ;;  %v905_v11 = vmul.f32 %v901_v60, %v2437_v6 }
 0x471   :  { %v1694_v58 = vrot.slane %v1687_v54, %v868_v45  ;;  %v906_v14 = vmul.f32 %v902_v3, %v2440_v8 }
 0x473   :  { %v1695_v39 = vcombine.high %v1694_v58, %v1694_v58  ;;  %v1702_v57 = vrot.slane %v1694_v58, %v868_v45 }
 0x475   :  { %v1709_v61 = vrot.slane %v1695_v39, %v868_v45  ;;  %v1713_v62 = vrot.slane %v1702_v57, %v2426_v23  ;;  %v1717_v63 = vrot.slane %v1702_v57, %v2423_v22 }
 0x477   :  { %v1721_v5 = vrot.slane %v1709_v61, %v2426_v23  ;;  %v1725_v9 = vrot.slane %v1709_v61, %v2423_v22  ;;  %v1726_v10 = vcombine.low %v1713_v62, %v1717_v63 }
 0x479   :  { %v1727_v12 = vcombine.low %v1721_v5, %v1725_v9  ;;  %v1730_v13 = vmul.f32 %v1726_v10, %v2455_v32 }
 0x47b   :  { %v1731_v0 = vmul.f32 %v1727_v12, %v2458_v33  ;;  %v1734_v15 = vadd.f32 %v1730_v13, %v905_v11 }
 0x47d   :  { %v1735_v16 = vadd.f32 %v1731_v0, %v906_v14  ;;  %1736 = vst [vmem:[%s2610_s10] sm:$0xff] %v1734_v15 }
 0x47f   :  { %1737 = vst [vmem:[%s2610_s10 + $0x8] sm:$0xff] %v1735_v16 }
 0x480   :  { %1742 = vsyncpa [#allocation3], 1 }
 0x481   :  { %1743 = vsyncpa [#allocation5], 1 }

</bundles_post_ra>
